<compile_context>
chip_gen: v6e
topology: v6e:2x2x1
jax: 0.10.0
libtpu: 0.0.40
codegen_flags: <defaults>
</compile_context>

<pallas_src>
import functools

import jax
import jax.numpy as jnp
import numpy as np
from jax import lax
from jax.experimental import pallas as pl
from jax.experimental.pallas import tpu as pltpu


# ---------------------------------------------------------------------------
# Pallas kernel: fused input-projection -> LSTM recurrence -> output heads.
# Grid: (batch_blocks [parallel], time_blocks [arbitrary/serial]).
# h/c are carried across time blocks in VMEM scratch.
# ---------------------------------------------------------------------------
def _lstm_fused_kernel(xin_ref, beff_ref, h0_ref, c0_ref,
                       wihx_ref, whh_ref, whead_ref, bhead_ref,
                       out_ref, h_s, c_s, *, hidden_dim, ts, unroll):
    H = hidden_dim
    Bb = h0_ref.shape[0]
    EpT = whead_ref.shape[1]

    @pl.when(pl.program_id(1) == 0)
    def _():
        h_s[...] = h0_ref[...]
        c_s[...] = c0_ref[...]

    # Loop-invariant loads / broadcasts hoisted out of the recurrence.
    wihx = wihx_ref[...]                      # (E+T, 4H)   g-cols pre-scaled x2
    whh = whh_ref[...]                        # (H,   4H)   g-cols pre-scaled x2
    whead = whead_ref[...]                    # (H,  E+T)   fused [event|time]
    beff = beff_ref[...]                      # (Bb, 4H)    per-batch effective bias
    bhead = jnp.broadcast_to(bhead_ref[...], (Bb, EpT))

    def body(t, carry):
        h_prev, c_prev = carry
        # Non-recurrent input projection: independent of h_prev, overlaps with
        # the previous step's gate math (MXU has ample slack).
        gx = jnp.dot(xin_ref[t], wihx, preferred_element_type=jnp.float32) + beff
        # Serial part of the chain.
        gates = gx + jnp.dot(h_prev, whh, preferred_element_type=jnp.float32)
        # One full-vreg (Bb, 4H=128) sigmoid for all four gates; the g-gate
        # pre-activation was scaled by 2, so tanh(z) = 2*sigmoid(2z) - 1.
        s = jax.nn.sigmoid(gates)
        i_g = s[:, 0 * H:1 * H]
        f_g = s[:, 1 * H:2 * H]
        g_g = 2.0 * s[:, 2 * H:3 * H] - 1.0
        o_g = s[:, 3 * H:4 * H]
        c_new = f_g * c_prev + i_g * g_g
        h_new = o_g * jnp.tanh(c_new)
        # Fused heads: parallel MXU work off the serial chain; h never hits HBM.
        out_ref[t] = (jnp.dot(h_new, whead, preferred_element_type=jnp.float32)
                      + bhead).astype(out_ref.dtype)
        return (h_new, c_new)

    h_fin, c_fin = lax.fori_loop(0, ts, body, (h_s[...], c_s[...]), unroll=unroll)
    h_s[...] = h_fin                          # carry across time blocks
    c_s[...] = c_fin


def _round_up(x, m):
    return ((x + m - 1) // m) * m


def lstm_events_forward(inp, teams_tensor, params):
    """inp: (B, S, E+T) f32; teams_tensor: (1, B, H) f32.
    Returns (event_space (B, S, E), time_space (B, S, T))."""
    B, S, _ = inp.shape
    H = params["w_hh_t"].shape[0]
    E = params["w_ev_t"].shape[1]
    T = params["w_tm_t"].shape[1]
    in_size = E + T

    teams = teams_tensor[0]                                  # (B, H)

    # Split W_ih^T into raw-input part and (constant-per-sequence) teams part.
    w_ih_x = params["w_ih_t"][:in_size]                      # (E+T, 4H)
    w_ih_teams = params["w_ih_t"][in_size:]                  # (H,   4H)

    # Fold the constant teams contribution into a per-batch effective bias.
    b_eff = params["b_gates"] + teams @ w_ih_teams           # (B, 4H)
    w_hh = params["w_hh_t"]                                  # (H, 4H)

    # Pre-scale the g-gate (cell-candidate) columns by 2 so the kernel can use
    # a single full-vreg sigmoid: tanh(z) = 2*sigmoid(2z) - 1.  Free (trace time).
    gscale = jnp.concatenate([jnp.ones((1, 2 * H), jnp.float32),
                              jnp.full((1, H), 2.0, jnp.float32),
                              jnp.ones((1, H), jnp.float32)], axis=1)    # (1, 4H)
    w_ih_x = w_ih_x * gscale
    w_hh = w_hh * gscale
    b_eff = b_eff * gscale

    # Fused output heads: [event | time].
    w_head = jnp.concatenate([params["w_ev_t"], params["w_tm_t"]], axis=1)  # (H, E+T)
    b_head = jnp.concatenate([params["b_ev"], params["b_tm"]], axis=1)      # (1, E+T)

    # --- batch padding / blocking (sublane-aligned; 2 blocks -> 2nd TC on v7x) ---
    if B > 8:
        Bp = _round_up(B, 16)
        n_bblocks = 2
    else:
        Bp = 8
        n_bblocks = 1
    Bb = Bp // n_bblocks
    padB = Bp - B

    x_sbf = jnp.transpose(inp, (1, 0, 2))                    # (S, B, E+T)
    h0 = teams
    if padB:
        x_sbf = jnp.pad(x_sbf, ((0, 0), (0, padB), (0, 0)))
        h0 = jnp.pad(h0, ((0, padB), (0, 0)))
        b_eff = jnp.pad(b_eff, ((0, padB), (0, 0)))
    c0 = h0

    # --- time padding / blocking (no divisor-of-S requirement) -------------------
    n_tblocks = max(1, (S + 127) // 128)      # <= ~128 timesteps per grid step
    TS = (S + n_tblocks - 1) // n_tblocks
    S_pad = n_tblocks * TS
    if S_pad > S:
        x_sbf = jnp.pad(x_sbf, ((0, S_pad - S), (0, 0), (0, 0)))
    unroll = True if TS <= 16 else 8          # partial unroll for large blocks

    kernel = functools.partial(_lstm_fused_kernel, hidden_dim=H, ts=TS,
                               unroll=unroll)

    heads = pl.pallas_call(
        kernel,
        out_shape=jax.ShapeDtypeStruct((S_pad, Bp, E + T), jnp.float32),
        grid_spec=pltpu.PrefetchScalarGridSpec(
            num_scalar_prefetch=0,
            grid=(n_bblocks, n_tblocks),
            in_specs=[
                pl.BlockSpec((TS, Bb, in_size), lambda bb, tb: (tb, bb, 0)),  # raw input
                pl.BlockSpec((Bb, 4 * H), lambda bb, tb: (bb, 0)),            # b_eff
                pl.BlockSpec((Bb, H), lambda bb, tb: (bb, 0)),                # h0
                pl.BlockSpec((Bb, H), lambda bb, tb: (bb, 0)),                # c0
                pl.BlockSpec((in_size, 4 * H), lambda bb, tb: (0, 0)),        # W_ih_x^T
                pl.BlockSpec((H, 4 * H), lambda bb, tb: (0, 0)),              # W_hh^T
                pl.BlockSpec((H, E + T), lambda bb, tb: (0, 0)),              # head weights
                pl.BlockSpec((1, E + T), lambda bb, tb: (0, 0)),              # head bias
            ],
            out_specs=pl.BlockSpec((TS, Bb, E + T), lambda bb, tb: (tb, bb, 0)),
            scratch_shapes=[pltpu.VMEM((Bb, H), jnp.float32),                 # h carry
                            pltpu.VMEM((Bb, H), jnp.float32)],                # c carry
        ),
        compiler_params=pltpu.CompilerParams(
            dimension_semantics=("parallel", "arbitrary")),   # batch || , time serial
    )(x_sbf, b_eff, h0, c0, w_ih_x, w_hh, w_head, b_head)

    heads = jnp.transpose(heads[:S, :B, :], (1, 0, 2))        # (B, S, E+T), small
    return heads[..., :E], heads[..., E:]


# ---------------------------------------------------------------------------
# Pure-JAX reference (original un-factored math) for a correctness check.
# ---------------------------------------------------------------------------
def reference_forward(inp, teams_tensor, params):
    B, S, _ = inp.shape
    H = params["w_hh_t"].shape[0]
    teams = teams_tensor[0]
    x = jnp.concatenate(
        [inp, jnp.broadcast_to(teams[:, None, :], (B, S, H))], axis=2)

    def step(carry, x_t):
        h, c = carry
        gates = x_t @ params["w_ih_t"] + h @ params["w_hh_t"] + params["b_gates"]
        i = jax.nn.sigmoid(gates[:, 0 * H:1 * H])
        f = jax.nn.sigmoid(gates[:, 1 * H:2 * H])
        g = jnp.tanh(gates[:, 2 * H:3 * H])
        o = jax.nn.sigmoid(gates[:, 3 * H:4 * H])
        c = f * c + i * g
        h = o * jnp.tanh(c)
        return (h, c), h

    _, hs = jax.lax.scan(step, (teams, teams), jnp.transpose(x, (1, 0, 2)))
    hs = jnp.transpose(hs, (1, 0, 2))                                   # (B, S, H)
    ev = hs @ params["w_ev_t"] + params["b_ev"]
    tm = hs @ params["w_tm_t"] + params["b_tm"]
    return ev, tm


# ---------------------------------------------------------------------------
def make_params(key, hidden_dim, event_types_size, time_types_size):
    """Deterministic synthetic parameters, PyTorch-style uniform(-1/sqrt(H), 1/sqrt(H))."""
    in_size = event_types_size + time_types_size + hidden_dim
    bound = 1.0 / np.sqrt(hidden_dim)
    ks = jax.random.split(key, 10)
    u = lambda k, shape: jax.random.uniform(k, shape, jnp.float32, -bound, bound)
    return {
        "w_ih_t": u(ks[0], (in_size, 4 * hidden_dim)),      # W_ih^T
        "w_hh_t": u(ks[1], (hidden_dim, 4 * hidden_dim)),   # W_hh^T
        "b_gates": u(ks[2], (1, 4 * hidden_dim)) + u(ks[3], (1, 4 * hidden_dim)),  # b_ih+b_hh
        "w_ev_t": u(ks[4], (hidden_dim, event_types_size)),
        "b_ev": u(ks[5], (1, event_types_size)),
        "w_tm_t": u(ks[6], (hidden_dim, time_types_size)),
        "b_tm": u(ks[7], (1, time_types_size)),
    }


if __name__ == "__main__":
    # Small shapes consistent with the module (module uses seq=208; we use 8).
    B, S = 2, 8
    HIDDEN, N_EVENTS, N_TIMES = 32, 16, 8

    key = jax.random.PRNGKey(0)
    k_in, k_teams, k_par = jax.random.split(key, 3)

    inp = jax.random.normal(k_in, (B, S, N_EVENTS + N_TIMES), jnp.float32)
    teams_tensor = jax.random.normal(k_teams, (1, B, HIDDEN), jnp.float32)  # (num_layers, B, H)
    params = make_params(k_par, HIDDEN, N_EVENTS, N_TIMES)

    ev, tm = jax.jit(lstm_events_forward)(inp, teams_tensor, params)
    jax.block_until_ready((ev, tm))

    ev_ref, tm_ref = reference_forward(inp, teams_tensor, params)
    np.testing.assert_allclose(np.asarray(ev), np.asarray(ev_ref), atol=2e-3, rtol=2e-3)
    np.testing.assert_allclose(np.asarray(tm), np.asarray(tm_ref), atol=2e-3, rtol=2e-3)
    assert ev.shape == (B, S, N_EVENTS) and tm.shape == (B, S, N_TIMES)

    print("KERNEL_OK")
</pallas_src>

<mosaic_0001>
module attributes {stable_mosaic.version = 11 : i64} {
  func.func @_lstm_fused_kernel(%arg0: i32, %arg1: i32, %arg2: memref<8x8x24xf32, #tpu.memory_space<vmem>>, %arg3: memref<8x128xf32, #tpu.memory_space<vmem>>, %arg4: memref<8x32xf32, #tpu.memory_space<vmem>>, %arg5: memref<8x32xf32, #tpu.memory_space<vmem>>, %arg6: memref<24x128xf32, #tpu.memory_space<vmem>>, %arg7: memref<32x128xf32, #tpu.memory_space<vmem>>, %arg8: memref<32x24xf32, #tpu.memory_space<vmem>>, %arg9: memref<1x24xf32, #tpu.memory_space<vmem>>, %arg10: memref<8x8x24xf32, #tpu.memory_space<vmem>>, %arg11: memref<8x32xf32, #tpu.memory_space<vmem>>, %arg12: memref<8x32xf32, #tpu.memory_space<vmem>>) attributes {dimension_semantics = [#tpu.dimension_semantics<parallel>, #tpu.dimension_semantics<arbitrary>], iteration_bounds = array<i64: 1, 1>, scalar_prefetch = 0 : i64, scratch_operands = 2 : i64, tpu.core_type = #tpu.core_type<tc>, window_params = [{transform_indices = @transform_0, window_bounds = array<i64: 8, 8, 24>}, {transform_indices = @transform_1, window_bounds = array<i64: 8, 128>}, {transform_indices = @transform_2, window_bounds = array<i64: 8, 32>}, {transform_indices = @transform_3, window_bounds = array<i64: 8, 32>}, {pipeline_mode = #tpu.pipeline_mode<synchronous>, transform_indices = @transform_4, window_bounds = array<i64: 24, 128>}, {pipeline_mode = #tpu.pipeline_mode<synchronous>, transform_indices = @transform_5, window_bounds = array<i64: 32, 128>}, {pipeline_mode = #tpu.pipeline_mode<synchronous>, transform_indices = @transform_6, window_bounds = array<i64: 32, 24>}, {pipeline_mode = #tpu.pipeline_mode<synchronous>, transform_indices = @transform_7, window_bounds = array<i64: 1, 24>}, {transform_indices = @transform_8, window_bounds = array<i64: 8, 8, 24>}]} {
    %c0_i32 = arith.constant 0 : i32
    %0 = arith.cmpi eq, %arg1, %c0_i32 : i32
    %1 = arith.extui %0 : i1 to i32
    %c0_i32_0 = arith.constant 0 : i32
    %2 = arith.cmpi ne, %1, %c0_i32_0 : i32
    scf.if %2 {
      %c0_98 = arith.constant 0 : index
      %c0_99 = arith.constant 0 : index
      %262 = vector.load %arg4[%c0_98, %c0_99] : memref<8x32xf32, #tpu.memory_space<vmem>>, vector<8x32xf32>
      %c0_100 = arith.constant 0 : index
      %c0_101 = arith.constant 0 : index
      %263 = vector.load %arg11[%c0_100, %c0_101] : memref<8x32xf32, #tpu.memory_space<vmem>>, vector<8x32xf32>
      tpu.vector_store %arg11[%c0_100, %c0_101], %262 {strides = array<i32>} : memref<8x32xf32, #tpu.memory_space<vmem>>, vector<8x32xf32>,
      %c0_102 = arith.constant 0 : index
      %c0_103 = arith.constant 0 : index
      %264 = vector.load %arg5[%c0_102, %c0_103] : memref<8x32xf32, #tpu.memory_space<vmem>>, vector<8x32xf32>
      %c0_104 = arith.constant 0 : index
      %c0_105 = arith.constant 0 : index
      %265 = vector.load %arg12[%c0_104, %c0_105] : memref<8x32xf32, #tpu.memory_space<vmem>>, vector<8x32xf32>
      tpu.vector_store %arg12[%c0_104, %c0_105], %264 {strides = array<i32>} : memref<8x32xf32, #tpu.memory_space<vmem>>, vector<8x32xf32>,
    } else {
    }
    %c0 = arith.constant 0 : index
    %c0_1 = arith.constant 0 : index
    %3 = vector.load %arg6[%c0, %c0_1] : memref<24x128xf32, #tpu.memory_space<vmem>>, vector<24x128xf32>
    %c0_2 = arith.constant 0 : index
    %c0_3 = arith.constant 0 : index
    %4 = vector.load %arg7[%c0_2, %c0_3] : memref<32x128xf32, #tpu.memory_space<vmem>>, vector<32x128xf32>
    %c0_4 = arith.constant 0 : index
    %c0_5 = arith.constant 0 : index
    %5 = vector.load %arg8[%c0_4, %c0_5] : memref<32x24xf32, #tpu.memory_space<vmem>>, vector<32x24xf32>
    %c0_6 = arith.constant 0 : index
    %c0_7 = arith.constant 0 : index
    %6 = vector.load %arg3[%c0_6, %c0_7] : memref<8x128xf32, #tpu.memory_space<vmem>>, vector<8x128xf32>
    %c0_8 = arith.constant 0 : index
    %c0_9 = arith.constant 0 : index
    %7 = vector.load %arg9[%c0_8, %c0_9] : memref<1x24xf32, #tpu.memory_space<vmem>>, vector<1x24xf32>
    %8 = vector.shape_cast %7 : vector<1x24xf32> to vector<1x24xf32>
    %9 = vector.broadcast %8 : vector<1x24xf32> to vector<8x24xf32>
    %c0_10 = arith.constant 0 : index
    %c0_11 = arith.constant 0 : index
    %10 = vector.load %arg11[%c0_10, %c0_11] : memref<8x32xf32, #tpu.memory_space<vmem>>, vector<8x32xf32>
    %c0_12 = arith.constant 0 : index
    %c0_13 = arith.constant 0 : index
    %11 = vector.load %arg12[%c0_12, %c0_13] : memref<8x32xf32, #tpu.memory_space<vmem>>, vector<8x32xf32>
    %c0_i32_14 = arith.constant 0 : i32
    %12 = arith.index_cast %c0_i32_14 : i32 to index
    %c0_15 = arith.constant 0 : index
    %c0_16 = arith.constant 0 : index
    %13 = vector.load %arg2[%12, %c0_15, %c0_16] : memref<8x8x24xf32, #tpu.memory_space<vmem>>, vector<1x8x24xf32>
    %14 = vector.shape_cast %13 : vector<1x8x24xf32> to vector<8x24xf32>
    %cst = arith.constant dense<0.000000e+00> : vector<8x128xf32>
    %15 = tpu.matmul %14, %3, %cst {dimension_numbers = #tpu.dot_dimension_numbers<[1], [0], [0], [1], [0, 0, 1, 1], [], []>} : vector<8x24xf32>, vector<24x128xf32>, vector<8x128xf32> -> vector<8x128xf32>
    %16 = arith.addf %15, %6 : vector<8x128xf32>
    %cst_17 = arith.constant dense<0.000000e+00> : vector<8x128xf32>
    %17 = tpu.matmul %10, %4, %cst_17 {dimension_numbers = #tpu.dot_dimension_numbers<[1], [0], [0], [1], [0, 0, 1, 1], [], []>} : vector<8x32xf32>, vector<32x128xf32>, vector<8x128xf32> -> vector<8x128xf32>
    %18 = arith.addf %16, %17 : vector<8x128xf32>
    %19 = arith.negf %18 : vector<8x128xf32>
    %20 = math.exp %19 : vector<8x128xf32>
    %cst_18 = arith.constant 1.000000e+00 : f32
    %21 = vector.broadcast %cst_18 : f32 to vector<8x128xf32>
    %22 = arith.addf %21, %20 : vector<8x128xf32>
    %23 = arith.divf %21, %22 : vector<8x128xf32>
    %24 = vector.extract_strided_slice %23 {offsets = [0, 0], sizes = [8, 32], strides = [1, 1]} : vector<8x128xf32> to vector<8x32xf32>
    %25 = vector.extract_strided_slice %23 {offsets = [0, 32], sizes = [8, 32], strides = [1, 1]} : vector<8x128xf32> to vector<8x32xf32>
    %26 = vector.extract_strided_slice %23 {offsets = [0, 64], sizes = [8, 32], strides = [1, 1]} : vector<8x128xf32> to vector<8x32xf32>
    %cst_19 = arith.constant 2.000000e+00 : f32
    %27 = vector.broadcast %cst_19 : f32 to vector<8x32xf32>
    %28 = arith.mulf %27, %26 : vector<8x32xf32>
    %cst_20 = arith.constant 1.000000e+00 : f32
    %29 = vector.broadcast %cst_20 : f32 to vector<8x32xf32>
    %30 = arith.subf %28, %29 : vector<8x32xf32>
    %31 = vector.extract_strided_slice %23 {offsets = [0, 96], sizes = [8, 32], strides = [1, 1]} : vector<8x128xf32> to vector<8x32xf32>
    %32 = arith.mulf %25, %11 : vector<8x32xf32>
    %33 = arith.mulf %24, %30 : vector<8x32xf32>
    %34 = arith.addf %32, %33 : vector<8x32xf32>
    %35 = math.tanh %34 : vector<8x32xf32>
    %36 = arith.mulf %31, %35 : vector<8x32xf32>
    %cst_21 = arith.constant dense<0.000000e+00> : vector<8x24xf32>
    %37 = tpu.matmul %36, %5, %cst_21 {dimension_numbers = #tpu.dot_dimension_numbers<[1], [0], [0], [1], [0, 0, 1, 1], [], []>} : vector<8x32xf32>, vector<32x24xf32>, vector<8x24xf32> -> vector<8x24xf32>
    %38 = arith.addf %37, %9 : vector<8x24xf32>
    %39 = arith.index_cast %c0_i32_14 : i32 to index
    %c0_22 = arith.constant 0 : index
    %c0_23 = arith.constant 0 : index
    %40 = vector.load %arg10[%39, %c0_22, %c0_23] : memref<8x8x24xf32, #tpu.memory_space<vmem>>, vector<1x8x24xf32>
    %41 = vector.shape_cast %40 : vector<1x8x24xf32> to vector<8x24xf32>
    %42 = vector.shape_cast %38 : vector<8x24xf32> to vector<1x8x24xf32>
    tpu.vector_store %arg10[%39, %c0_22, %c0_23], %42 {strides = array<i32>} : memref<8x8x24xf32, #tpu.memory_space<vmem>>, vector<1x8x24xf32>,
    %c1_i32 = arith.constant 1 : i32
    %43 = arith.index_cast %c1_i32 : i32 to index
    %c0_24 = arith.constant 0 : index
    %c0_25 = arith.constant 0 : index
    %44 = vector.load %arg2[%43, %c0_24, %c0_25] : memref<8x8x24xf32, #tpu.memory_space<vmem>>, vector<1x8x24xf32>
    %45 = vector.shape_cast %44 : vector<1x8x24xf32> to vector<8x24xf32>
    %cst_26 = arith.constant dense<0.000000e+00> : vector<8x128xf32>
    %46 = tpu.matmul %45, %3, %cst_26 {dimension_numbers = #tpu.dot_dimension_numbers<[1], [0], [0], [1], [0, 0, 1, 1], [], []>} : vector<8x24xf32>, vector<24x128xf32>, vector<8x128xf32> -> vector<8x128xf32>
    %47 = arith.addf %46, %6 : vector<8x128xf32>
    %cst_27 = arith.constant dense<0.000000e+00> : vector<8x128xf32>
    %48 = tpu.matmul %36, %4, %cst_27 {dimension_numbers = #tpu.dot_dimension_numbers<[1], [0], [0], [1], [0, 0, 1, 1], [], []>} : vector<8x32xf32>, vector<32x128xf32>, vector<8x128xf32> -> vector<8x128xf32>
    %49 = arith.addf %47, %48 : vector<8x128xf32>
    %50 = arith.negf %49 : vector<8x128xf32>
    %51 = math.exp %50 : vector<8x128xf32>
    %cst_28 = arith.constant 1.000000e+00 : f32
    %52 = vector.broadcast %cst_28 : f32 to vector<8x128xf32>
    %53 = arith.addf %52, %51 : vector<8x128xf32>
    %54 = arith.divf %52, %53 : vector<8x128xf32>
    %55 = vector.extract_strided_slice %54 {offsets = [0, 0], sizes = [8, 32], strides = [1, 1]} : vector<8x128xf32> to vector<8x32xf32>
    %56 = vector.extract_strided_slice %54 {offsets = [0, 32], sizes = [8, 32], strides = [1, 1]} : vector<8x128xf32> to vector<8x32xf32>
    %57 = vector.extract_strided_slice %54 {offsets = [0, 64], sizes = [8, 32], strides = [1, 1]} : vector<8x128xf32> to vector<8x32xf32>
    %cst_29 = arith.constant 2.000000e+00 : f32
    %58 = vector.broadcast %cst_29 : f32 to vector<8x32xf32>
    %59 = arith.mulf %58, %57 : vector<8x32xf32>
    %cst_30 = arith.constant 1.000000e+00 : f32
    %60 = vector.broadcast %cst_30 : f32 to vector<8x32xf32>
    %61 = arith.subf %59, %60 : vector<8x32xf32>
    %62 = vector.extract_strided_slice %54 {offsets = [0, 96], sizes = [8, 32], strides = [1, 1]} : vector<8x128xf32> to vector<8x32xf32>
    %63 = arith.mulf %56, %34 : vector<8x32xf32>
    %64 = arith.mulf %55, %61 : vector<8x32xf32>
    %65 = arith.addf %63, %64 : vector<8x32xf32>
    %66 = math.tanh %65 : vector<8x32xf32>
    %67 = arith.mulf %62, %66 : vector<8x32xf32>
    %cst_31 = arith.constant dense<0.000000e+00> : vector<8x24xf32>
    %68 = tpu.matmul %67, %5, %cst_31 {dimension_numbers = #tpu.dot_dimension_numbers<[1], [0], [0], [1], [0, 0, 1, 1], [], []>} : vector<8x32xf32>, vector<32x24xf32>, vector<8x24xf32> -> vector<8x24xf32>
    %69 = arith.addf %68, %9 : vector<8x24xf32>
    %70 = arith.index_cast %c1_i32 : i32 to index
    %c0_32 = arith.constant 0 : index
    %c0_33 = arith.constant 0 : index
    %71 = vector.load %arg10[%70, %c0_32, %c0_33] : memref<8x8x24xf32, #tpu.memory_space<vmem>>, vector<1x8x24xf32>
    %72 = vector.shape_cast %71 : vector<1x8x24xf32> to vector<8x24xf32>
    %73 = vector.shape_cast %69 : vector<8x24xf32> to vector<1x8x24xf32>
    tpu.vector_store %arg10[%70, %c0_32, %c0_33], %73 {strides = array<i32>} : memref<8x8x24xf32, #tpu.memory_space<vmem>>, vector<1x8x24xf32>,
    %c2_i32 = arith.constant 2 : i32
    %74 = arith.index_cast %c2_i32 : i32 to index
    %c0_34 = arith.constant 0 : index
    %c0_35 = arith.constant 0 : index
    %75 = vector.load %arg2[%74, %c0_34, %c0_35] : memref<8x8x24xf32, #tpu.memory_space<vmem>>, vector<1x8x24xf32>
    %76 = vector.shape_cast %75 : vector<1x8x24xf32> to vector<8x24xf32>
    %cst_36 = arith.constant dense<0.000000e+00> : vector<8x128xf32>
    %77 = tpu.matmul %76, %3, %cst_36 {dimension_numbers = #tpu.dot_dimension_numbers<[1], [0], [0], [1], [0, 0, 1, 1], [], []>} : vector<8x24xf32>, vector<24x128xf32>, vector<8x128xf32> -> vector<8x128xf32>
    %78 = arith.addf %77, %6 : vector<8x128xf32>
    %cst_37 = arith.constant dense<0.000000e+00> : vector<8x128xf32>
    %79 = tpu.matmul %67, %4, %cst_37 {dimension_numbers = #tpu.dot_dimension_numbers<[1], [0], [0], [1], [0, 0, 1, 1], [], []>} : vector<8x32xf32>, vector<32x128xf32>, vector<8x128xf32> -> vector<8x128xf32>
    %80 = arith.addf %78, %79 : vector<8x128xf32>
    %81 = arith.negf %80 : vector<8x128xf32>
    %82 = math.exp %81 : vector<8x128xf32>
    %cst_38 = arith.constant 1.000000e+00 : f32
    %83 = vector.broadcast %cst_38 : f32 to vector<8x128xf32>
    %84 = arith.addf %83, %82 : vector<8x128xf32>
    %85 = arith.divf %83, %84 : vector<8x128xf32>
    %86 = vector.extract_strided_slice %85 {offsets = [0, 0], sizes = [8, 32], strides = [1, 1]} : vector<8x128xf32> to vector<8x32xf32>
    %87 = vector.extract_strided_slice %85 {offsets = [0, 32], sizes = [8, 32], strides = [1, 1]} : vector<8x128xf32> to vector<8x32xf32>
    %88 = vector.extract_strided_slice %85 {offsets = [0, 64], sizes = [8, 32], strides = [1, 1]} : vector<8x128xf32> to vector<8x32xf32>
    %cst_39 = arith.constant 2.000000e+00 : f32
    %89 = vector.broadcast %cst_39 : f32 to vector<8x32xf32>
    %90 = arith.mulf %89, %88 : vector<8x32xf32>
    %cst_40 = arith.constant 1.000000e+00 : f32
    %91 = vector.broadcast %cst_40 : f32 to vector<8x32xf32>
    %92 = arith.subf %90, %91 : vector<8x32xf32>
    %93 = vector.extract_strided_slice %85 {offsets = [0, 96], sizes = [8, 32], strides = [1, 1]} : vector<8x128xf32> to vector<8x32xf32>
    %94 = arith.mulf %87, %65 : vector<8x32xf32>
    %95 = arith.mulf %86, %92 : vector<8x32xf32>
    %96 = arith.addf %94, %95 : vector<8x32xf32>
    %97 = math.tanh %96 : vector<8x32xf32>
    %98 = arith.mulf %93, %97 : vector<8x32xf32>
    %cst_41 = arith.constant dense<0.000000e+00> : vector<8x24xf32>
    %99 = tpu.matmul %98, %5, %cst_41 {dimension_numbers = #tpu.dot_dimension_numbers<[1], [0], [0], [1], [0, 0, 1, 1], [], []>} : vector<8x32xf32>, vector<32x24xf32>, vector<8x24xf32> -> vector<8x24xf32>
    %100 = arith.addf %99, %9 : vector<8x24xf32>
    %101 = arith.index_cast %c2_i32 : i32 to index
    %c0_42 = arith.constant 0 : index
    %c0_43 = arith.constant 0 : index
    %102 = vector.load %arg10[%101, %c0_42, %c0_43] : memref<8x8x24xf32, #tpu.memory_space<vmem>>, vector<1x8x24xf32>
    %103 = vector.shape_cast %102 : vector<1x8x24xf32> to vector<8x24xf32>
    %104 = vector.shape_cast %100 : vector<8x24xf32> to vector<1x8x24xf32>
    tpu.vector_store %arg10[%101, %c0_42, %c0_43], %104 {strides = array<i32>} : memref<8x8x24xf32, #tpu.memory_space<vmem>>, vector<1x8x24xf32>,
    %c3_i32 = arith.constant 3 : i32
    %105 = arith.index_cast %c3_i32 : i32 to index
    %c0_44 = arith.constant 0 : index
    %c0_45 = arith.constant 0 : index
    %106 = vector.load %arg2[%105, %c0_44, %c0_45] : memref<8x8x24xf32, #tpu.memory_space<vmem>>, vector<1x8x24xf32>
    %107 = vector.shape_cast %106 : vector<1x8x24xf32> to vector<8x24xf32>
    %cst_46 = arith.constant dense<0.000000e+00> : vector<8x128xf32>
    %108 = tpu.matmul %107, %3, %cst_46 {dimension_numbers = #tpu.dot_dimension_numbers<[1], [0], [0], [1], [0, 0, 1, 1], [], []>} : vector<8x24xf32>, vector<24x128xf32>, vector<8x128xf32> -> vector<8x128xf32>
    %109 = arith.addf %108, %6 : vector<8x128xf32>
    %cst_47 = arith.constant dense<0.000000e+00> : vector<8x128xf32>
    %110 = tpu.matmul %98, %4, %cst_47 {dimension_numbers = #tpu.dot_dimension_numbers<[1], [0], [0], [1], [0, 0, 1, 1], [], []>} : vector<8x32xf32>, vector<32x128xf32>, vector<8x128xf32> -> vector<8x128xf32>
    %111 = arith.addf %109, %110 : vector<8x128xf32>
    %112 = arith.negf %111 : vector<8x128xf32>
    %113 = math.exp %112 : vector<8x128xf32>
    %cst_48 = arith.constant 1.000000e+00 : f32
    %114 = vector.broadcast %cst_48 : f32 to vector<8x128xf32>
    %115 = arith.addf %114, %113 : vector<8x128xf32>
    %116 = arith.divf %114, %115 : vector<8x128xf32>
    %117 = vector.extract_strided_slice %116 {offsets = [0, 0], sizes = [8, 32], strides = [1, 1]} : vector<8x128xf32> to vector<8x32xf32>
    %118 = vector.extract_strided_slice %116 {offsets = [0, 32], sizes = [8, 32], strides = [1, 1]} : vector<8x128xf32> to vector<8x32xf32>
    %119 = vector.extract_strided_slice %116 {offsets = [0, 64], sizes = [8, 32], strides = [1, 1]} : vector<8x128xf32> to vector<8x32xf32>
    %cst_49 = arith.constant 2.000000e+00 : f32
    %120 = vector.broadcast %cst_49 : f32 to vector<8x32xf32>
    %121 = arith.mulf %120, %119 : vector<8x32xf32>
    %cst_50 = arith.constant 1.000000e+00 : f32
    %122 = vector.broadcast %cst_50 : f32 to vector<8x32xf32>
    %123 = arith.subf %121, %122 : vector<8x32xf32>
    %124 = vector.extract_strided_slice %116 {offsets = [0, 96], sizes = [8, 32], strides = [1, 1]} : vector<8x128xf32> to vector<8x32xf32>
    %125 = arith.mulf %118, %96 : vector<8x32xf32>
    %126 = arith.mulf %117, %123 : vector<8x32xf32>
    %127 = arith.addf %125, %126 : vector<8x32xf32>
    %128 = math.tanh %127 : vector<8x32xf32>
    %129 = arith.mulf %124, %128 : vector<8x32xf32>
    %cst_51 = arith.constant dense<0.000000e+00> : vector<8x24xf32>
    %130 = tpu.matmul %129, %5, %cst_51 {dimension_numbers = #tpu.dot_dimension_numbers<[1], [0], [0], [1], [0, 0, 1, 1], [], []>} : vector<8x32xf32>, vector<32x24xf32>, vector<8x24xf32> -> vector<8x24xf32>
    %131 = arith.addf %130, %9 : vector<8x24xf32>
    %132 = arith.index_cast %c3_i32 : i32 to index
    %c0_52 = arith.constant 0 : index
    %c0_53 = arith.constant 0 : index
    %133 = vector.load %arg10[%132, %c0_52, %c0_53] : memref<8x8x24xf32, #tpu.memory_space<vmem>>, vector<1x8x24xf32>
    %134 = vector.shape_cast %133 : vector<1x8x24xf32> to vector<8x24xf32>
    %135 = vector.shape_cast %131 : vector<8x24xf32> to vector<1x8x24xf32>
    tpu.vector_store %arg10[%132, %c0_52, %c0_53], %135 {strides = array<i32>} : memref<8x8x24xf32, #tpu.memory_space<vmem>>, vector<1x8x24xf32>,
    %c4_i32 = arith.constant 4 : i32
    %136 = arith.index_cast %c4_i32 : i32 to index
    %c0_54 = arith.constant 0 : index
    %c0_55 = arith.constant 0 : index
    %137 = vector.load %arg2[%136, %c0_54, %c0_55] : memref<8x8x24xf32, #tpu.memory_space<vmem>>, vector<1x8x24xf32>
    %138 = vector.shape_cast %137 : vector<1x8x24xf32> to vector<8x24xf32>
    %cst_56 = arith.constant dense<0.000000e+00> : vector<8x128xf32>
    %139 = tpu.matmul %138, %3, %cst_56 {dimension_numbers = #tpu.dot_dimension_numbers<[1], [0], [0], [1], [0, 0, 1, 1], [], []>} : vector<8x24xf32>, vector<24x128xf32>, vector<8x128xf32> -> vector<8x128xf32>
    %140 = arith.addf %139, %6 : vector<8x128xf32>
    %cst_57 = arith.constant dense<0.000000e+00> : vector<8x128xf32>
    %141 = tpu.matmul %129, %4, %cst_57 {dimension_numbers = #tpu.dot_dimension_numbers<[1], [0], [0], [1], [0, 0, 1, 1], [], []>} : vector<8x32xf32>, vector<32x128xf32>, vector<8x128xf32> -> vector<8x128xf32>
    %142 = arith.addf %140, %141 : vector<8x128xf32>
    %143 = arith.negf %142 : vector<8x128xf32>
    %144 = math.exp %143 : vector<8x128xf32>
    %cst_58 = arith.constant 1.000000e+00 : f32
    %145 = vector.broadcast %cst_58 : f32 to vector<8x128xf32>
    %146 = arith.addf %145, %144 : vector<8x128xf32>
    %147 = arith.divf %145, %146 : vector<8x128xf32>
    %148 = vector.extract_strided_slice %147 {offsets = [0, 0], sizes = [8, 32], strides = [1, 1]} : vector<8x128xf32> to vector<8x32xf32>
    %149 = vector.extract_strided_slice %147 {offsets = [0, 32], sizes = [8, 32], strides = [1, 1]} : vector<8x128xf32> to vector<8x32xf32>
    %150 = vector.extract_strided_slice %147 {offsets = [0, 64], sizes = [8, 32], strides = [1, 1]} : vector<8x128xf32> to vector<8x32xf32>
    %cst_59 = arith.constant 2.000000e+00 : f32
    %151 = vector.broadcast %cst_59 : f32 to vector<8x32xf32>
    %152 = arith.mulf %151, %150 : vector<8x32xf32>
    %cst_60 = arith.constant 1.000000e+00 : f32
    %153 = vector.broadcast %cst_60 : f32 to vector<8x32xf32>
    %154 = arith.subf %152, %153 : vector<8x32xf32>
    %155 = vector.extract_strided_slice %147 {offsets = [0, 96], sizes = [8, 32], strides = [1, 1]} : vector<8x128xf32> to vector<8x32xf32>
    %156 = arith.mulf %149, %127 : vector<8x32xf32>
    %157 = arith.mulf %148, %154 : vector<8x32xf32>
    %158 = arith.addf %156, %157 : vector<8x32xf32>
    %159 = math.tanh %158 : vector<8x32xf32>
    %160 = arith.mulf %155, %159 : vector<8x32xf32>
    %cst_61 = arith.constant dense<0.000000e+00> : vector<8x24xf32>
    %161 = tpu.matmul %160, %5, %cst_61 {dimension_numbers = #tpu.dot_dimension_numbers<[1], [0], [0], [1], [0, 0, 1, 1], [], []>} : vector<8x32xf32>, vector<32x24xf32>, vector<8x24xf32> -> vector<8x24xf32>
    %162 = arith.addf %161, %9 : vector<8x24xf32>
    %163 = arith.index_cast %c4_i32 : i32 to index
    %c0_62 = arith.constant 0 : index
    %c0_63 = arith.constant 0 : index
    %164 = vector.load %arg10[%163, %c0_62, %c0_63] : memref<8x8x24xf32, #tpu.memory_space<vmem>>, vector<1x8x24xf32>
    %165 = vector.shape_cast %164 : vector<1x8x24xf32> to vector<8x24xf32>
    %166 = vector.shape_cast %162 : vector<8x24xf32> to vector<1x8x24xf32>
    tpu.vector_store %arg10[%163, %c0_62, %c0_63], %166 {strides = array<i32>} : memref<8x8x24xf32, #tpu.memory_space<vmem>>, vector<1x8x24xf32>,
    %c5_i32 = arith.constant 5 : i32
    %167 = arith.index_cast %c5_i32 : i32 to index
    %c0_64 = arith.constant 0 : index
    %c0_65 = arith.constant 0 : index
    %168 = vector.load %arg2[%167, %c0_64, %c0_65] : memref<8x8x24xf32, #tpu.memory_space<vmem>>, vector<1x8x24xf32>
    %169 = vector.shape_cast %168 : vector<1x8x24xf32> to vector<8x24xf32>
    %cst_66 = arith.constant dense<0.000000e+00> : vector<8x128xf32>
    %170 = tpu.matmul %169, %3, %cst_66 {dimension_numbers = #tpu.dot_dimension_numbers<[1], [0], [0], [1], [0, 0, 1, 1], [], []>} : vector<8x24xf32>, vector<24x128xf32>, vector<8x128xf32> -> vector<8x128xf32>
    %171 = arith.addf %170, %6 : vector<8x128xf32>
    %cst_67 = arith.constant dense<0.000000e+00> : vector<8x128xf32>
    %172 = tpu.matmul %160, %4, %cst_67 {dimension_numbers = #tpu.dot_dimension_numbers<[1], [0], [0], [1], [0, 0, 1, 1], [], []>} : vector<8x32xf32>, vector<32x128xf32>, vector<8x128xf32> -> vector<8x128xf32>
    %173 = arith.addf %171, %172 : vector<8x128xf32>
    %174 = arith.negf %173 : vector<8x128xf32>
    %175 = math.exp %174 : vector<8x128xf32>
    %cst_68 = arith.constant 1.000000e+00 : f32
    %176 = vector.broadcast %cst_68 : f32 to vector<8x128xf32>
    %177 = arith.addf %176, %175 : vector<8x128xf32>
    %178 = arith.divf %176, %177 : vector<8x128xf32>
    %179 = vector.extract_strided_slice %178 {offsets = [0, 0], sizes = [8, 32], strides = [1, 1]} : vector<8x128xf32> to vector<8x32xf32>
    %180 = vector.extract_strided_slice %178 {offsets = [0, 32], sizes = [8, 32], strides = [1, 1]} : vector<8x128xf32> to vector<8x32xf32>
    %181 = vector.extract_strided_slice %178 {offsets = [0, 64], sizes = [8, 32], strides = [1, 1]} : vector<8x128xf32> to vector<8x32xf32>
    %cst_69 = arith.constant 2.000000e+00 : f32
    %182 = vector.broadcast %cst_69 : f32 to vector<8x32xf32>
    %183 = arith.mulf %182, %181 : vector<8x32xf32>
    %cst_70 = arith.constant 1.000000e+00 : f32
    %184 = vector.broadcast %cst_70 : f32 to vector<8x32xf32>
    %185 = arith.subf %183, %184 : vector<8x32xf32>
    %186 = vector.extract_strided_slice %178 {offsets = [0, 96], sizes = [8, 32], strides = [1, 1]} : vector<8x128xf32> to vector<8x32xf32>
    %187 = arith.mulf %180, %158 : vector<8x32xf32>
    %188 = arith.mulf %179, %185 : vector<8x32xf32>
    %189 = arith.addf %187, %188 : vector<8x32xf32>
    %190 = math.tanh %189 : vector<8x32xf32>
    %191 = arith.mulf %186, %190 : vector<8x32xf32>
    %cst_71 = arith.constant dense<0.000000e+00> : vector<8x24xf32>
    %192 = tpu.matmul %191, %5, %cst_71 {dimension_numbers = #tpu.dot_dimension_numbers<[1], [0], [0], [1], [0, 0, 1, 1], [], []>} : vector<8x32xf32>, vector<32x24xf32>, vector<8x24xf32> -> vector<8x24xf32>
    %193 = arith.addf %192, %9 : vector<8x24xf32>
    %194 = arith.index_cast %c5_i32 : i32 to index
    %c0_72 = arith.constant 0 : index
    %c0_73 = arith.constant 0 : index
    %195 = vector.load %arg10[%194, %c0_72, %c0_73] : memref<8x8x24xf32, #tpu.memory_space<vmem>>, vector<1x8x24xf32>
    %196 = vector.shape_cast %195 : vector<1x8x24xf32> to vector<8x24xf32>
    %197 = vector.shape_cast %193 : vector<8x24xf32> to vector<1x8x24xf32>
    tpu.vector_store %arg10[%194, %c0_72, %c0_73], %197 {strides = array<i32>} : memref<8x8x24xf32, #tpu.memory_space<vmem>>, vector<1x8x24xf32>,
    %c6_i32 = arith.constant 6 : i32
    %198 = arith.index_cast %c6_i32 : i32 to index
    %c0_74 = arith.constant 0 : index
    %c0_75 = arith.constant 0 : index
    %199 = vector.load %arg2[%198, %c0_74, %c0_75] : memref<8x8x24xf32, #tpu.memory_space<vmem>>, vector<1x8x24xf32>
    %200 = vector.shape_cast %199 : vector<1x8x24xf32> to vector<8x24xf32>
    %cst_76 = arith.constant dense<0.000000e+00> : vector<8x128xf32>
    %201 = tpu.matmul %200, %3, %cst_76 {dimension_numbers = #tpu.dot_dimension_numbers<[1], [0], [0], [1], [0, 0, 1, 1], [], []>} : vector<8x24xf32>, vector<24x128xf32>, vector<8x128xf32> -> vector<8x128xf32>
    %202 = arith.addf %201, %6 : vector<8x128xf32>
    %cst_77 = arith.constant dense<0.000000e+00> : vector<8x128xf32>
    %203 = tpu.matmul %191, %4, %cst_77 {dimension_numbers = #tpu.dot_dimension_numbers<[1], [0], [0], [1], [0, 0, 1, 1], [], []>} : vector<8x32xf32>, vector<32x128xf32>, vector<8x128xf32> -> vector<8x128xf32>
    %204 = arith.addf %202, %203 : vector<8x128xf32>
    %205 = arith.negf %204 : vector<8x128xf32>
    %206 = math.exp %205 : vector<8x128xf32>
    %cst_78 = arith.constant 1.000000e+00 : f32
    %207 = vector.broadcast %cst_78 : f32 to vector<8x128xf32>
    %208 = arith.addf %207, %206 : vector<8x128xf32>
    %209 = arith.divf %207, %208 : vector<8x128xf32>
    %210 = vector.extract_strided_slice %209 {offsets = [0, 0], sizes = [8, 32], strides = [1, 1]} : vector<8x128xf32> to vector<8x32xf32>
    %211 = vector.extract_strided_slice %209 {offsets = [0, 32], sizes = [8, 32], strides = [1, 1]} : vector<8x128xf32> to vector<8x32xf32>
    %212 = vector.extract_strided_slice %209 {offsets = [0, 64], sizes = [8, 32], strides = [1, 1]} : vector<8x128xf32> to vector<8x32xf32>
    %cst_79 = arith.constant 2.000000e+00 : f32
    %213 = vector.broadcast %cst_79 : f32 to vector<8x32xf32>
    %214 = arith.mulf %213, %212 : vector<8x32xf32>
    %cst_80 = arith.constant 1.000000e+00 : f32
    %215 = vector.broadcast %cst_80 : f32 to vector<8x32xf32>
    %216 = arith.subf %214, %215 : vector<8x32xf32>
    %217 = vector.extract_strided_slice %209 {offsets = [0, 96], sizes = [8, 32], strides = [1, 1]} : vector<8x128xf32> to vector<8x32xf32>
    %218 = arith.mulf %211, %189 : vector<8x32xf32>
    %219 = arith.mulf %210, %216 : vector<8x32xf32>
    %220 = arith.addf %218, %219 : vector<8x32xf32>
    %221 = math.tanh %220 : vector<8x32xf32>
    %222 = arith.mulf %217, %221 : vector<8x32xf32>
    %cst_81 = arith.constant dense<0.000000e+00> : vector<8x24xf32>
    %223 = tpu.matmul %222, %5, %cst_81 {dimension_numbers = #tpu.dot_dimension_numbers<[1], [0], [0], [1], [0, 0, 1, 1], [], []>} : vector<8x32xf32>, vector<32x24xf32>, vector<8x24xf32> -> vector<8x24xf32>
    %224 = arith.addf %223, %9 : vector<8x24xf32>
    %225 = arith.index_cast %c6_i32 : i32 to index
    %c0_82 = arith.constant 0 : index
    %c0_83 = arith.constant 0 : index
    %226 = vector.load %arg10[%225, %c0_82, %c0_83] : memref<8x8x24xf32, #tpu.memory_space<vmem>>, vector<1x8x24xf32>
    %227 = vector.shape_cast %226 : vector<1x8x24xf32> to vector<8x24xf32>
    %228 = vector.shape_cast %224 : vector<8x24xf32> to vector<1x8x24xf32>
    tpu.vector_store %arg10[%225, %c0_82, %c0_83], %228 {strides = array<i32>} : memref<8x8x24xf32, #tpu.memory_space<vmem>>, vector<1x8x24xf32>,
    %c7_i32 = arith.constant 7 : i32
    %229 = arith.index_cast %c7_i32 : i32 to index
    %c0_84 = arith.constant 0 : index
    %c0_85 = arith.constant 0 : index
    %230 = vector.load %arg2[%229, %c0_84, %c0_85] : memref<8x8x24xf32, #tpu.memory_space<vmem>>, vector<1x8x24xf32>
    %231 = vector.shape_cast %230 : vector<1x8x24xf32> to vector<8x24xf32>
    %cst_86 = arith.constant dense<0.000000e+00> : vector<8x128xf32>
    %232 = tpu.matmul %231, %3, %cst_86 {dimension_numbers = #tpu.dot_dimension_numbers<[1], [0], [0], [1], [0, 0, 1, 1], [], []>} : vector<8x24xf32>, vector<24x128xf32>, vector<8x128xf32> -> vector<8x128xf32>
    %233 = arith.addf %232, %6 : vector<8x128xf32>
    %cst_87 = arith.constant dense<0.000000e+00> : vector<8x128xf32>
    %234 = tpu.matmul %222, %4, %cst_87 {dimension_numbers = #tpu.dot_dimension_numbers<[1], [0], [0], [1], [0, 0, 1, 1], [], []>} : vector<8x32xf32>, vector<32x128xf32>, vector<8x128xf32> -> vector<8x128xf32>
    %235 = arith.addf %233, %234 : vector<8x128xf32>
    %236 = arith.negf %235 : vector<8x128xf32>
    %237 = math.exp %236 : vector<8x128xf32>
    %cst_88 = arith.constant 1.000000e+00 : f32
    %238 = vector.broadcast %cst_88 : f32 to vector<8x128xf32>
    %239 = arith.addf %238, %237 : vector<8x128xf32>
    %240 = arith.divf %238, %239 : vector<8x128xf32>
    %241 = vector.extract_strided_slice %240 {offsets = [0, 0], sizes = [8, 32], strides = [1, 1]} : vector<8x128xf32> to vector<8x32xf32>
    %242 = vector.extract_strided_slice %240 {offsets = [0, 32], sizes = [8, 32], strides = [1, 1]} : vector<8x128xf32> to vector<8x32xf32>
    %243 = vector.extract_strided_slice %240 {offsets = [0, 64], sizes = [8, 32], strides = [1, 1]} : vector<8x128xf32> to vector<8x32xf32>
    %cst_89 = arith.constant 2.000000e+00 : f32
    %244 = vector.broadcast %cst_89 : f32 to vector<8x32xf32>
    %245 = arith.mulf %244, %243 : vector<8x32xf32>
    %cst_90 = arith.constant 1.000000e+00 : f32
    %246 = vector.broadcast %cst_90 : f32 to vector<8x32xf32>
    %247 = arith.subf %245, %246 : vector<8x32xf32>
    %248 = vector.extract_strided_slice %240 {offsets = [0, 96], sizes = [8, 32], strides = [1, 1]} : vector<8x128xf32> to vector<8x32xf32>
    %249 = arith.mulf %242, %220 : vector<8x32xf32>
    %250 = arith.mulf %241, %247 : vector<8x32xf32>
    %251 = arith.addf %249, %250 : vector<8x32xf32>
    %252 = math.tanh %251 : vector<8x32xf32>
    %253 = arith.mulf %248, %252 : vector<8x32xf32>
    %cst_91 = arith.constant dense<0.000000e+00> : vector<8x24xf32>
    %254 = tpu.matmul %253, %5, %cst_91 {dimension_numbers = #tpu.dot_dimension_numbers<[1], [0], [0], [1], [0, 0, 1, 1], [], []>} : vector<8x32xf32>, vector<32x24xf32>, vector<8x24xf32> -> vector<8x24xf32>
    %255 = arith.addf %254, %9 : vector<8x24xf32>
    %256 = arith.index_cast %c7_i32 : i32 to index
    %c0_92 = arith.constant 0 : index
    %c0_93 = arith.constant 0 : index
    %257 = vector.load %arg10[%256, %c0_92, %c0_93] : memref<8x8x24xf32, #tpu.memory_space<vmem>>, vector<1x8x24xf32>
    %258 = vector.shape_cast %257 : vector<1x8x24xf32> to vector<8x24xf32>
    %259 = vector.shape_cast %255 : vector<8x24xf32> to vector<1x8x24xf32>
    tpu.vector_store %arg10[%256, %c0_92, %c0_93], %259 {strides = array<i32>} : memref<8x8x24xf32, #tpu.memory_space<vmem>>, vector<1x8x24xf32>,
    %c8_i32 = arith.constant 8 : i32
    %c0_94 = arith.constant 0 : index
    %c0_95 = arith.constant 0 : index
    %260 = vector.load %arg11[%c0_94, %c0_95] : memref<8x32xf32, #tpu.memory_space<vmem>>, vector<8x32xf32>
    tpu.vector_store %arg11[%c0_94, %c0_95], %253 {strides = array<i32>} : memref<8x32xf32, #tpu.memory_space<vmem>>, vector<8x32xf32>,
    %c0_96 = arith.constant 0 : index
    %c0_97 = arith.constant 0 : index
    %261 = vector.load %arg12[%c0_96, %c0_97] : memref<8x32xf32, #tpu.memory_space<vmem>>, vector<8x32xf32>
    tpu.vector_store %arg12[%c0_96, %c0_97], %251 {strides = array<i32>} : memref<8x32xf32, #tpu.memory_space<vmem>>, vector<8x32xf32>,
    return
  }
  func.func @transform_0(%arg0: i32, %arg1: i32) -> (i32, i32, i32) {
    %c0_i32 = arith.constant 0 : i32
    %c0_i32_0 = arith.constant 0 : i32
    return %arg1, %arg0, %c0_i32 : i32, i32, i32
  }
  func.func @transform_1(%arg0: i32, %arg1: i32) -> (i32, i32) {
    %c0_i32 = arith.constant 0 : i32
    %c0_i32_0 = arith.constant 0 : i32
    return %arg0, %c0_i32 : i32, i32
  }
  func.func @transform_2(%arg0: i32, %arg1: i32) -> (i32, i32) {
    %c0_i32 = arith.constant 0 : i32
    %c0_i32_0 = arith.constant 0 : i32
    return %arg0, %c0_i32 : i32, i32
  }
  func.func @transform_3(%arg0: i32, %arg1: i32) -> (i32, i32) {
    %c0_i32 = arith.constant 0 : i32
    %c0_i32_0 = arith.constant 0 : i32
    return %arg0, %c0_i32 : i32, i32
  }
  func.func @transform_4(%arg0: i32, %arg1: i32) -> (i32, i32) {
    %c0_i32 = arith.constant 0 : i32
    %c0_i32_0 = arith.constant 0 : i32
    %c0_i32_1 = arith.constant 0 : i32
    return %c0_i32, %c0_i32_0 : i32, i32
  }
  func.func @transform_5(%arg0: i32, %arg1: i32) -> (i32, i32) {
    %c0_i32 = arith.constant 0 : i32
    %c0_i32_0 = arith.constant 0 : i32
    %c0_i32_1 = arith.constant 0 : i32
    return %c0_i32, %c0_i32_0 : i32, i32
  }
  func.func @transform_6(%arg0: i32, %arg1: i32) -> (i32, i32) {
    %c0_i32 = arith.constant 0 : i32
    %c0_i32_0 = arith.constant 0 : i32
    %c0_i32_1 = arith.constant 0 : i32
    return %c0_i32, %c0_i32_0 : i32, i32
  }
  func.func @transform_7(%arg0: i32, %arg1: i32) -> (i32, i32) {
    %c0_i32 = arith.constant 0 : i32
    %c0_i32_0 = arith.constant 0 : i32
    %c0_i32_1 = arith.constant 0 : i32
    return %c0_i32, %c0_i32_0 : i32, i32
  }
  func.func @transform_8(%arg0: i32, %arg1: i32) -> (i32, i32, i32) {
    %c0_i32 = arith.constant 0 : i32
    %c0_i32_0 = arith.constant 0 : i32
    return %arg1, %arg0, %c0_i32 : i32, i32, i32
  }
}

</mosaic_0001>

<bundles_post_ra>
// kernel: lstm_events_forward.1
= control target key start
LH: loop header
LB: loop body
LE: loop exit
PB: predicated region body
PF: predicated region fallthrough
CT: control target
= control target key end

     0   :  { %v2529_v0 = vmov 0.0   ;;  %vm34_vm0 = vcmask 261120   ;;  %vm60_vm1 = vcmask 195584   ;;  %vm2530_vm2 = vmmov 0   ;;  %s3011_s4 = inlined_call_operand.vmem [shape: f32[24,128], index: 4, kind: input, shape index: {}]   ;;  %s3012_s5 = inlined_call_operand.vmem [shape: f32[32,128], index: 5, kind: input, shape index: {}]   ;;  %s3013_s2 = inlined_call_operand.vmem [shape: f32[8,32], index: 2, kind: input, shape index: {}, may-alias: {2,3}]   ;;  %s3014_s0 = inlined_call_operand.vmem [shape: f32[8,8,24], index: 0, kind: input, shape index: {}]   ;;  %s3015_s3 = inlined_call_operand.vmem [shape: f32[8,32], index: 3, kind: input, shape index: {}, may-alias: {2,3}]   ;;  %s3016_s1 = inlined_call_operand.vmem [shape: f32[8,128], index: 1, kind: input, shape index: {}]   ;;  %s3017_s6 = inlined_call_operand.vmem [shape: f32[32,24], index: 6, kind: input, shape index: {}]   ;;  %s3018_s7 = inlined_call_operand.vmem [shape: f32[1,24], index: 7, kind: input, shape index: {}]   ;;  %s3019_s8 = inlined_call_operand.vmem [shape: f32[8,8,24], index: 8, kind: output, shape index: {}]  }
   0x1   :  { %2228 = vmatprep.subr.mxu0 %v2529_v0  ;;  %v2583_v1 = vld [vmem:[%s3011_s4 + $0x10] sm:$0xff]  ;;  %2237 = vmatprep.subr.mxu1 %v2529_v0  ;;  %v2589_v2 = vld [vmem:[%s3012_s5 + $0x18] sm:$0xff]  ;;  %v2594_v3 = vld [vmem:[%s3011_s4 + $0x8] sm:$0xff] }
   0x2   :  { %2229 = vmatpush3.msra.mxu0 %v2583_v1  ;;  %2238 = vmatpush3.msra.mxu1 %v2589_v2  ;;  %v2601_v4 = vld [vmem:[%s3012_s5 + $0x10] sm:$0xff]  ;;  %v2608_v5 = vld [vmem:[%s3011_s4] sm:$0xff]  ;;  %v2621_v8 = vld [vmem:[%s3012_s5 + $0x8] sm:$0xff] }
   0x3   :  { %2230 = vmatprep.subr.mxu0 %v2529_v0  ;;  %2239 = vmatprep.subr.mxu1 %v2529_v0  ;;  %v33_v6 = vld [vmem:[%s3013_s2] sm:$0xff]  ;;  %v2672_v32 = vld [vmem:[%s3017_s6 + $0x18] sm:$0xff]  ;;  %v2677_v33 = vld [vmem:[%s3017_s6 + $0x10] sm:$0xff] }
   0x4   :  { %2231 = vmatpush3.msra.mxu0 %v2594_v3  ;;  %2240 = vmatpush3.msra.mxu1 %v2601_v4  ;;  %v59_v7 = vld [vmem:[%s3014_s0] sm:$0xff]  ;;  %35 = vst.msk [vmem:[#allocation2] sm:$0xff] %vm34_vm0, %v33_v6  ;;  %v2684_v34 = vld [vmem:[%s3017_s6 + $0x8] sm:$0xff]  ;;  %v2074_v63 = vld [vmem:[%s3014_s0 + $0x10] sm:$0xff] }
   0x5   :  { %2232 = vmatprep.subr.mxu0 %v2529_v0  ;;  %2234 = vmatprep.mubr.msk.f32.mxu0 %vm2530_vm2, %v2529_v0  ;;  %v2632_v9 = vld [vmem:[%s3012_s5] sm:$0xff]  ;;  %v2067_v37 = vld [vmem:[%s3014_s0 + $0x8] sm:$0xff] }
   0x6   :  { %2233 = vmatpush3.msra.mxu0 %v2608_v5  ;;  %2241 = vmatprep.subr.mxu1 %v2529_v0  ;;  %v36_v11 = vld [vmem:[%s3015_s3] sm:$0xff]  ;;  %s2531_s3 = smov 64  }
   0x7   :  { %2235 = vmatmul.mubr.msk.f32.vlgmr.msra.gmra.mxu0 %vm60_vm1, %v59_v7  ;;  %2242 = vmatpush3.msra.mxu1 %v2621_v8  ;;  %37 = vst.msk [vmem:[#allocation3] sm:$0xff] %vm34_vm0, %v36_v11  ;;  %v2660_v12 = vld [vmem:[%s3016_s1] sm:$0xff]  ;;  %s2532_s1 = smov 32  }
   0x8   :  { %2243 = vmatprep.subr.mxu1 %v2529_v0  ;;  %2245 = vmatprep.mubr.msk.f32.mxu1 %vm2530_vm2, %v2529_v0  ;;  %v2691_v35 = vld [vmem:[%s3017_s6] sm:$0xff]  ;;  %s2533_s6 = smov 96  }
   0x9   :  { %2244 = vmatpush3.msra.mxu1 %v2632_v9  ;;  %2248 = vmatprep.subr.mxu0 %v2529_v0  ;;  %v2736_v43 = vld [vmem:[%s3018_s7] ss:$0 sm:$0xff] }
   0xa   :  { %2259 = vmatprep.subr.mxu1 %v2529_v0  ;;  %2256 = vmatprep.mubr.msk.f32.mxu0 %vm2530_vm2, %v2529_v0 }
   0xb   :  { %v57_v10 = vld [vmem:[#allocation2] sm:$0xff]  ;;  %2249 = vmatpush3.msra.mxu0 %v2672_v32 }
   0xc   :  { %2246 = vmatmul.mubr.msk.f32.vlgmr.msra.gmra.mxu1 %vm34_vm0, %v57_v10  ;;  %2250 = vmatprep.subr.mxu0 %v2529_v0 }
   0xd   :  { %2260 = vmatpush3.msra.mxu1 %v2583_v1  ;;  %2265 = vmatprep.mubr.msk.f32.mxu1 %vm2530_vm2, %v2529_v0 }
   0xe   :  { %2261 = vmatprep.subr.mxu1 %v2529_v0  ;;  %v58_v25 = vld [vmem:[#allocation3] sm:$0xff]  ;;  %2251 = vmatpush3.msra.mxu0 %v2677_v33 }
   0xf   :  { %2262 = vmatpush3.msra.mxu1 %v2594_v3  ;;  %2252 = vmatprep.subr.mxu0 %v2529_v0 }
  0x10   :  { %2263 = vmatprep.subr.mxu1 %v2529_v0  ;;  %2253 = vmatpush3.msra.mxu0 %v2684_v34 }
  0x11   :  { %2264 = vmatpush3.msra.mxu1 %v2608_v5  ;;  %2254 = vmatprep.subr.mxu0 %v2529_v0 }
  0x12   :  { %2279 = vmatprep.subr.mxu1 %v2529_v0  ;;  %2255 = vmatpush3.msra.mxu0 %v2691_v35 }
  0x13   :  { %2268 = vmatprep.subr.mxu0 %v2529_v0  ;;  %2266 = vmatmul.mubr.msk.f32.vlgmr.msra.gmra.mxu1 %vm60_vm1, %v2067_v37  ;;  %v2081_v37 = vld [vmem:[%s3014_s0 + $0x18] sm:$0xff] }
  0x14   :  { %2280 = vmatpush3.msra.mxu1 %v2672_v32  ;;  %2287 = vmatprep.mubr.msk.f32.mxu1 %vm2530_vm2, %v2529_v0 }
  0x15   :  { %2281 = vmatprep.subr.mxu1 %v2529_v0 }
  0x16   :  { %2282 = vmatpush3.msra.mxu1 %v2677_v33 }
  0x17   :  { %2283 = vmatprep.subr.mxu1 %v2529_v0 }
  0x18   :  { %2284 = vmatpush3.msra.mxu1 %v2684_v34 }
  0x19   :  { %2285 = vmatprep.subr.mxu1 %v2529_v0 }
  0x1a   :  { %2286 = vmatpush3.msra.mxu1 %v2691_v35 }
  0x1b   :  { %2299 = vmatprep.subr.mxu1 %v2529_v0 }
  0xc7   :  { %v130_v13 = vpop.f32.mrf.mxu0 }
  0xc8   :  { %v131_v14 = vadd.f32 %v130_v13, %v2660_v12 }
  0xc9   :  { %v2236_v15 = vpop.f32.mrf.mxu0 }
  0xcc   :  { %v204_v16 = vpop.f32.mrf.mxu1 }
  0xcd   :  { %v208_v17 = vadd.f32 %v204_v16, %v131_v14 }
  0xce   :  { %v2247_v18 = vpop.f32.mrf.mxu1 }
  0xcf   :  { %v2064_v19 = vmul.f32 -1.442695, %v208_v17 }
  0xd1   :  { %2481 = vpow2.f32 %v2064_v19 }
  0xd3   :  { %v385_v41 = vpop.f32.mrf.mxu1 }
  0xd4   :  { %v386_v47 = vadd.f32 %v385_v41, %v2660_v12 }
  0xd5   :  { %v2267_v42 = vpop.f32.mrf.mxu1 }
  0xde   :  { %v2482_v20 = vpop.eup %2481 }
  0xdf   :  { %v212_v21 = vadd.f32 1.0, %v2482_v20 }
  0xe1   :  { %2483 = vrcp.f32 %v212_v21 }
  0xee   :  { %v2484_v22 = vpop.eup %2483 }
  0xef   :  { %v215_v23 = vmul.f32 2.0, %v2484_v22 }
  0xf1   :  { %v2065_v24 = vadd.f32 -1.0, %v215_v23 }
  0xf3   :  { %223 = vrot.lane.b32.xlu0 %v2065_v24, %s2531_s3 }
  0xf7   :  { %218 = vrot.lane.b32.xlu0 %v58_v25, %s2532_s1 }
 0x165   :  { %v224_v26 = vpop.permute.xlu0 %223 }
 0x166   :  { %v226_v27 = vmul.f32 %v2484_v22, %v224_v26 }
 0x168   :  { %228 = vrot.lane.b32.xlu1 %v226_v27, %s2532_s1 }
 0x169   :  { %v219_v28 = vpop.permute.xlu0 %218 }
 0x16a   :  { %v221_v29 = vmul.f32 %v2484_v22, %v219_v28 }
 0x1da   :  { %v229_v30 = vpop.permute.xlu1 %228 }
 0x1db   :  { %v2666_v31 = vadd.f32 %v229_v30, %v221_v29 }
 0x1dd   :  { %2485 = vtanh.f32 %v2666_v31 }
 0x1ea   :  { %v2486_v36 = vpop.eup %2485 }
 0x1eb   :  { %234 = vrot.lane.b32.xlu1 %v2486_v36, %s2531_s3 }
 0x25d   :  { %v235_v38 = vpop.permute.xlu1 %234 }
 0x25e   :  { %v237_v39 = vmul.f32 %v2484_v22, %v235_v38 }
 0x260   :  { %239 = vrot.lane.b32.xlu0 %v237_v39, %s2532_s1 }
 0x2d2   :  { %v240_v40 = vpop.permute.xlu0 %239 }
 0x2d3   :  { %2257 = vmatmul.mubr.msk.f32.vlgmr.msra.gmra.mxu0 %vm34_vm0, %v240_v40 }
 0x2d4   :  { %2269 = vmatpush3.msra.mxu0 %v2589_v2  ;;  %2276 = vmatprep.mubr.msk.f32.mxu0 %vm2530_vm2, %v2529_v0 }
 0x2d5   :  { %2270 = vmatprep.subr.mxu0 %v2529_v0 }
 0x2d6   :  { %2271 = vmatpush3.msra.mxu0 %v2601_v4 }
 0x2d7   :  { %2272 = vmatprep.subr.mxu0 %v2529_v0 }
 0x2d8   :  { %2273 = vmatpush3.msra.mxu0 %v2621_v8 }
 0x2d9   :  { %2274 = vmatprep.subr.mxu0 %v2529_v0 }
 0x2da   :  { %2275 = vmatpush3.msra.mxu0 %v2632_v9 }
 0x2db   :  { %2277 = vmatmul.mubr.msk.f32.vlgmr.msra.gmra.mxu0 %vm34_vm0, %v240_v40  ;;  %2290 = vmatprep.subr.mxu0 %v2529_v0 }
 0x2dc   :  { %2291 = vmatpush3.msra.mxu0 %v2583_v1  ;;  %2296 = vmatprep.mubr.msk.f32.mxu0 %vm2530_vm2, %v2529_v0 }
 0x2dd   :  { %2292 = vmatprep.subr.mxu0 %v2529_v0 }
 0x2de   :  { %2293 = vmatpush3.msra.mxu0 %v2594_v3 }
 0x2df   :  { %2294 = vmatprep.subr.mxu0 %v2529_v0 }
 0x2e0   :  { %2295 = vmatpush3.msra.mxu0 %v2608_v5 }
 0x2e1   :  { %2310 = vmatprep.subr.mxu0 %v2529_v0  ;;  %2297 = vmatmul.mubr.msk.f32.vlgmr.msra.gmra.mxu0 %vm60_vm1, %v2074_v63  ;;  %v2088_v63 = vld [vmem:[%s3014_s0 + $0x20] sm:$0xff] }
 0x2e2   :  { %2311 = vmatpush3.msra.mxu0 %v2672_v32  ;;  %2318 = vmatprep.mubr.msk.f32.mxu0 %vm2530_vm2, %v2529_v0 }
 0x2e3   :  { %2312 = vmatprep.subr.mxu0 %v2529_v0 }
 0x2e4   :  { %2313 = vmatpush3.msra.mxu0 %v2677_v33 }
 0x2e5   :  { %2314 = vmatprep.subr.mxu0 %v2529_v0 }
 0x2e6   :  { %2315 = vmatpush3.msra.mxu0 %v2684_v34 }
 0x2e7   :  { %2316 = vmatprep.subr.mxu0 %v2529_v0 }
 0x2e8   :  { %2317 = vmatpush3.msra.mxu0 %v2691_v35 }
 0x2e9   :  { %2330 = vmatprep.subr.mxu0 %v2529_v0 }
 0x393   :  { %v309_v44 = vpop.f32.mrf.mxu0 }
 0x394   :  { %v310_v45 = vadd.f32 %v2736_v43, %v309_v44 }
 0x395   :  { %v2258_v46 = vpop.f32.mrf.mxu0 }
 0x396   :  { %313 = vst.msk [vmem:[%s3019_s8] sm:$0xff] %vm60_vm1, %v310_v45 }
 0x39b   :  { %v455_v48 = vpop.f32.mrf.mxu0 }
 0x39c   :  { %v459_v49 = vadd.f32 %v455_v48, %v386_v47 }
 0x39d   :  { %v2278_v50 = vpop.f32.mrf.mxu0 }
 0x39e   :  { %v2070_v51 = vmul.f32 -1.442695, %v459_v49 }
 0x3a0   :  { %2487 = vpow2.f32 %v2070_v51 }
 0x3a1   :  { %v633_v11 = vpop.f32.mrf.mxu0 }
 0x3a2   :  { %v634_v17 = vadd.f32 %v633_v11, %v2660_v12 }
 0x3a3   :  { %v2298_v13 = vpop.f32.mrf.mxu0 }
 0x3ad   :  { %v2488_v52 = vpop.eup %2487 }
 0x3ae   :  { %v463_v53 = vadd.f32 1.0, %v2488_v52 }
 0x3b0   :  { %2489 = vrcp.f32 %v463_v53 }
 0x3bd   :  { %v2490_v54 = vpop.eup %2489 }
 0x3be   :  { %v466_v55 = vmul.f32 2.0, %v2490_v54  ;;  %v468_v59 = vmul.f32 %v2490_v54, %v2666_v31 }
 0x3c0   :  { %v2071_v56 = vadd.f32 -1.0, %v466_v55 }
 0x3c2   :  { %470 = vrot.lane.b32.xlu1 %v2071_v56, %s2531_s3 }
 0x434   :  { %v471_v57 = vpop.permute.xlu1 %470 }
 0x435   :  { %v473_v58 = vmul.f32 %v2490_v54, %v471_v57 }
 0x437   :  { %475 = vrot.lane.b32.xlu0 %v473_v58, %s2532_s1 }
 0x4a9   :  { %v476_v60 = vpop.permute.xlu0 %475 }
 0x4aa   :  { %v478_v61 = vadd.f32 %v476_v60, %v468_v59 }
 0x4ac   :  { %2491 = vtanh.f32 %v478_v61 }
 0x4b9   :  { %v2492_v62 = vpop.eup %2491 }
 0x4ba   :  { %481 = vrot.lane.b32.xlu1 %v2492_v62, %s2531_s3 }
 0x52c   :  { %v482_v6 = vpop.permute.xlu1 %481 }
 0x52d   :  { %v484_v7 = vmul.f32 %v2490_v54, %v482_v6 }
 0x52f   :  { %486 = vrot.lane.b32.xlu0 %v484_v7, %s2532_s1 }
 0x5a1   :  { %v487_v10 = vpop.permute.xlu0 %486 }
 0x5a2   :  { %2288 = vmatmul.mubr.msk.f32.vlgmr.msra.gmra.mxu1 %vm34_vm0, %v487_v10 }
 0x5a3   :  { %2300 = vmatpush3.msra.mxu1 %v2589_v2  ;;  %2307 = vmatprep.mubr.msk.f32.mxu1 %vm2530_vm2, %v2529_v0 }
 0x5a4   :  { %2301 = vmatprep.subr.mxu1 %v2529_v0 }
 0x5a5   :  { %2302 = vmatpush3.msra.mxu1 %v2601_v4 }
 0x5a6   :  { %2303 = vmatprep.subr.mxu1 %v2529_v0 }
 0x5a7   :  { %2304 = vmatpush3.msra.mxu1 %v2621_v8 }
 0x5a8   :  { %2305 = vmatprep.subr.mxu1 %v2529_v0 }
 0x5a9   :  { %2306 = vmatpush3.msra.mxu1 %v2632_v9 }
 0x5aa   :  { %2308 = vmatmul.mubr.msk.f32.vlgmr.msra.gmra.mxu1 %vm34_vm0, %v487_v10  ;;  %2321 = vmatprep.subr.mxu1 %v2529_v0 }
 0x5ab   :  { %2322 = vmatpush3.msra.mxu1 %v2583_v1  ;;  %2327 = vmatprep.mubr.msk.f32.mxu1 %vm2530_vm2, %v2529_v0 }
 0x5ac   :  { %2323 = vmatprep.subr.mxu1 %v2529_v0 }
 0x5ad   :  { %2324 = vmatpush3.msra.mxu1 %v2594_v3 }
 0x5ae   :  { %2325 = vmatprep.subr.mxu1 %v2529_v0 }
 0x5af   :  { %2326 = vmatpush3.msra.mxu1 %v2608_v5 }
 0x5b0   :  { %2341 = vmatprep.subr.mxu1 %v2529_v0  ;;  %2328 = vmatmul.mubr.msk.f32.vlgmr.msra.gmra.mxu1 %vm60_vm1, %v2081_v37  ;;  %v2095_v37 = vld [vmem:[%s3014_s0 + $0x28] sm:$0xff] }
 0x5b1   :  { %2342 = vmatpush3.msra.mxu1 %v2672_v32  ;;  %2349 = vmatprep.mubr.msk.f32.mxu1 %vm2530_vm2, %v2529_v0 }
 0x5b2   :  { %2343 = vmatprep.subr.mxu1 %v2529_v0 }
 0x5b3   :  { %2344 = vmatpush3.msra.mxu1 %v2677_v33 }
 0x5b4   :  { %2345 = vmatprep.subr.mxu1 %v2529_v0 }
 0x5b5   :  { %2346 = vmatpush3.msra.mxu1 %v2684_v34 }
 0x5b6   :  { %2347 = vmatprep.subr.mxu1 %v2529_v0 }
 0x5b7   :  { %2348 = vmatpush3.msra.mxu1 %v2691_v35 }
 0x5b8   :  { %2361 = vmatprep.subr.mxu1 %v2529_v0 }
 0x662   :  { %v556_v14 = vpop.f32.mrf.mxu1 }
 0x663   :  { %v557_v15 = vadd.f32 %v2736_v43, %v556_v14 }
 0x664   :  { %v2289_v16 = vpop.f32.mrf.mxu1 }
 0x665   :  { %2073 = vst.msk [vmem:[%s3019_s8 + $0x8] sm:$0xff] %vm60_vm1, %v557_v15 }
 0x66a   :  { %v703_v18 = vpop.f32.mrf.mxu1 }
 0x66b   :  { %v707_v19 = vadd.f32 %v703_v18, %v634_v17 }
 0x66c   :  { %v2309_v20 = vpop.f32.mrf.mxu1 }
 0x66d   :  { %v2077_v21 = vmul.f32 -1.442695, %v707_v19 }
 0x66f   :  { %2493 = vpow2.f32 %v2077_v21 }
 0x670   :  { %v881_v41 = vpop.f32.mrf.mxu1 }
 0x671   :  { %v882_v47 = vadd.f32 %v881_v41, %v2660_v12 }
 0x672   :  { %v2329_v42 = vpop.f32.mrf.mxu1 }
 0x67c   :  { %v2494_v22 = vpop.eup %2493 }
 0x67d   :  { %v711_v23 = vadd.f32 1.0, %v2494_v22 }
 0x67f   :  { %2495 = vrcp.f32 %v711_v23 }
 0x68c   :  { %v2496_v24 = vpop.eup %2495 }
 0x68d   :  { %v714_v25 = vmul.f32 2.0, %v2496_v24  ;;  %v716_v29 = vmul.f32 %v2496_v24, %v478_v61 }
 0x68f   :  { %v2078_v26 = vadd.f32 -1.0, %v714_v25 }
 0x691   :  { %718 = vrot.lane.b32.xlu1 %v2078_v26, %s2531_s3 }
 0x703   :  { %v719_v27 = vpop.permute.xlu1 %718 }
 0x704   :  { %v721_v28 = vmul.f32 %v2496_v24, %v719_v27 }
 0x706   :  { %723 = vrot.lane.b32.xlu0 %v721_v28, %s2532_s1 }
 0x778   :  { %v724_v30 = vpop.permute.xlu0 %723 }
 0x779   :  { %v726_v31 = vadd.f32 %v724_v30, %v716_v29 }
 0x77b   :  { %2497 = vtanh.f32 %v726_v31 }
 0x788   :  { %v2498_v36 = vpop.eup %2497 }
 0x789   :  { %729 = vrot.lane.b32.xlu1 %v2498_v36, %s2531_s3 }
 0x7fb   :  { %v730_v38 = vpop.permute.xlu1 %729 }
 0x7fc   :  { %v732_v39 = vmul.f32 %v2496_v24, %v730_v38 }
 0x7fe   :  { %734 = vrot.lane.b32.xlu0 %v732_v39, %s2532_s1 }
 0x870   :  { %v735_v40 = vpop.permute.xlu0 %734 }
 0x871   :  { %2319 = vmatmul.mubr.msk.f32.vlgmr.msra.gmra.mxu0 %vm34_vm0, %v735_v40 }
 0x872   :  { %2331 = vmatpush3.msra.mxu0 %v2589_v2  ;;  %2338 = vmatprep.mubr.msk.f32.mxu0 %vm2530_vm2, %v2529_v0 }
 0x873   :  { %2332 = vmatprep.subr.mxu0 %v2529_v0 }
 0x874   :  { %2333 = vmatpush3.msra.mxu0 %v2601_v4 }
 0x875   :  { %2334 = vmatprep.subr.mxu0 %v2529_v0 }
 0x876   :  { %2335 = vmatpush3.msra.mxu0 %v2621_v8 }
 0x877   :  { %2336 = vmatprep.subr.mxu0 %v2529_v0 }
 0x878   :  { %2337 = vmatpush3.msra.mxu0 %v2632_v9 }
 0x879   :  { %2339 = vmatmul.mubr.msk.f32.vlgmr.msra.gmra.mxu0 %vm34_vm0, %v735_v40  ;;  %2352 = vmatprep.subr.mxu0 %v2529_v0 }
 0x87a   :  { %2353 = vmatpush3.msra.mxu0 %v2583_v1  ;;  %2358 = vmatprep.mubr.msk.f32.mxu0 %vm2530_vm2, %v2529_v0 }
 0x87b   :  { %2354 = vmatprep.subr.mxu0 %v2529_v0 }
 0x87c   :  { %2355 = vmatpush3.msra.mxu0 %v2594_v3 }
 0x87d   :  { %2356 = vmatprep.subr.mxu0 %v2529_v0 }
 0x87e   :  { %2357 = vmatpush3.msra.mxu0 %v2608_v5 }
 0x87f   :  { %2372 = vmatprep.subr.mxu0 %v2529_v0  ;;  %2359 = vmatmul.mubr.msk.f32.vlgmr.msra.gmra.mxu0 %vm60_vm1, %v2088_v63  ;;  %v2102_v63 = vld [vmem:[%s3014_s0 + $0x30] sm:$0xff] }
 0x880   :  { %2373 = vmatpush3.msra.mxu0 %v2672_v32  ;;  %2380 = vmatprep.mubr.msk.f32.mxu0 %vm2530_vm2, %v2529_v0 }
 0x881   :  { %2374 = vmatprep.subr.mxu0 %v2529_v0 }
 0x882   :  { %2375 = vmatpush3.msra.mxu0 %v2677_v33 }
 0x883   :  { %2376 = vmatprep.subr.mxu0 %v2529_v0 }
 0x884   :  { %2377 = vmatpush3.msra.mxu0 %v2684_v34 }
 0x885   :  { %2378 = vmatprep.subr.mxu0 %v2529_v0 }
 0x886   :  { %2379 = vmatpush3.msra.mxu0 %v2691_v35 }
 0x887   :  { %2392 = vmatprep.subr.mxu0 %v2529_v0 }
 0x931   :  { %v804_v44 = vpop.f32.mrf.mxu0 }
 0x932   :  { %v805_v45 = vadd.f32 %v2736_v43, %v804_v44 }
 0x933   :  { %v2320_v46 = vpop.f32.mrf.mxu0 }
 0x934   :  { %2080 = vst.msk [vmem:[%s3019_s8 + $0x10] sm:$0xff] %vm60_vm1, %v805_v45 }
 0x939   :  { %v951_v48 = vpop.f32.mrf.mxu0 }
 0x93a   :  { %v955_v49 = vadd.f32 %v951_v48, %v882_v47 }
 0x93b   :  { %v2340_v50 = vpop.f32.mrf.mxu0 }
 0x93c   :  { %v2084_v51 = vmul.f32 -1.442695, %v955_v49 }
 0x93e   :  { %2499 = vpow2.f32 %v2084_v51 }
 0x93f   :  { %v1129_v11 = vpop.f32.mrf.mxu0 }
 0x940   :  { %v1130_v17 = vadd.f32 %v1129_v11, %v2660_v12 }
 0x941   :  { %v2360_v13 = vpop.f32.mrf.mxu0 }
 0x94b   :  { %v2500_v52 = vpop.eup %2499 }
 0x94c   :  { %v959_v53 = vadd.f32 1.0, %v2500_v52 }
 0x94e   :  { %2501 = vrcp.f32 %v959_v53 }
 0x95b   :  { %v2502_v54 = vpop.eup %2501 }
 0x95c   :  { %v962_v55 = vmul.f32 2.0, %v2502_v54  ;;  %v964_v59 = vmul.f32 %v2502_v54, %v726_v31 }
 0x95e   :  { %v2085_v56 = vadd.f32 -1.0, %v962_v55 }
 0x960   :  { %966 = vrot.lane.b32.xlu1 %v2085_v56, %s2531_s3 }
 0x9d2   :  { %v967_v57 = vpop.permute.xlu1 %966 }
 0x9d3   :  { %v969_v58 = vmul.f32 %v2502_v54, %v967_v57 }
 0x9d5   :  { %971 = vrot.lane.b32.xlu0 %v969_v58, %s2532_s1 }
 0xa47   :  { %v972_v60 = vpop.permute.xlu0 %971 }
 0xa48   :  { %v974_v61 = vadd.f32 %v972_v60, %v964_v59 }
 0xa4a   :  { %2503 = vtanh.f32 %v974_v61 }
 0xa57   :  { %v2504_v62 = vpop.eup %2503 }
 0xa58   :  { %977 = vrot.lane.b32.xlu1 %v2504_v62, %s2531_s3 }
 0xaca   :  { %v978_v6 = vpop.permute.xlu1 %977 }
 0xacb   :  { %v980_v7 = vmul.f32 %v2502_v54, %v978_v6 }
 0xacd   :  { %982 = vrot.lane.b32.xlu0 %v980_v7, %s2532_s1 }
 0xb3f   :  { %v983_v10 = vpop.permute.xlu0 %982 }
 0xb40   :  { %2350 = vmatmul.mubr.msk.f32.vlgmr.msra.gmra.mxu1 %vm34_vm0, %v983_v10 }
 0xb41   :  { %2362 = vmatpush3.msra.mxu1 %v2589_v2  ;;  %2369 = vmatprep.mubr.msk.f32.mxu1 %vm2530_vm2, %v2529_v0 }
 0xb42   :  { %2363 = vmatprep.subr.mxu1 %v2529_v0 }
 0xb43   :  { %2364 = vmatpush3.msra.mxu1 %v2601_v4 }
 0xb44   :  { %2365 = vmatprep.subr.mxu1 %v2529_v0 }
 0xb45   :  { %2366 = vmatpush3.msra.mxu1 %v2621_v8 }
 0xb46   :  { %2367 = vmatprep.subr.mxu1 %v2529_v0 }
 0xb47   :  { %2368 = vmatpush3.msra.mxu1 %v2632_v9 }
 0xb48   :  { %2370 = vmatmul.mubr.msk.f32.vlgmr.msra.gmra.mxu1 %vm34_vm0, %v983_v10  ;;  %2383 = vmatprep.subr.mxu1 %v2529_v0 }
 0xb49   :  { %2384 = vmatpush3.msra.mxu1 %v2583_v1  ;;  %2389 = vmatprep.mubr.msk.f32.mxu1 %vm2530_vm2, %v2529_v0 }
 0xb4a   :  { %2385 = vmatprep.subr.mxu1 %v2529_v0 }
 0xb4b   :  { %2386 = vmatpush3.msra.mxu1 %v2594_v3 }
 0xb4c   :  { %2387 = vmatprep.subr.mxu1 %v2529_v0 }
 0xb4d   :  { %2388 = vmatpush3.msra.mxu1 %v2608_v5 }
 0xb4e   :  { %2403 = vmatprep.subr.mxu1 %v2529_v0  ;;  %2390 = vmatmul.mubr.msk.f32.vlgmr.msra.gmra.mxu1 %vm60_vm1, %v2095_v37 }
 0xb4f   :  { %2404 = vmatpush3.msra.mxu1 %v2672_v32  ;;  %2411 = vmatprep.mubr.msk.f32.mxu1 %vm2530_vm2, %v2529_v0 }
 0xb50   :  { %2405 = vmatprep.subr.mxu1 %v2529_v0 }
 0xb51   :  { %2406 = vmatpush3.msra.mxu1 %v2677_v33 }
 0xb52   :  { %2407 = vmatprep.subr.mxu1 %v2529_v0 }
 0xb53   :  { %2408 = vmatpush3.msra.mxu1 %v2684_v34 }
 0xb54   :  { %2409 = vmatprep.subr.mxu1 %v2529_v0 }
 0xb55   :  { %2410 = vmatpush3.msra.mxu1 %v2691_v35 }
 0xb56   :  { %2423 = vmatprep.subr.mxu1 %v2529_v0 }
 0xc00   :  { %v1052_v14 = vpop.f32.mrf.mxu1 }
 0xc01   :  { %v1053_v15 = vadd.f32 %v2736_v43, %v1052_v14 }
 0xc02   :  { %v2351_v16 = vpop.f32.mrf.mxu1 }
 0xc03   :  { %2087 = vst.msk [vmem:[%s3019_s8 + $0x18] sm:$0xff] %vm60_vm1, %v1053_v15 }
 0xc08   :  { %v1199_v18 = vpop.f32.mrf.mxu1 }
 0xc09   :  { %v1203_v19 = vadd.f32 %v1199_v18, %v1130_v17 }
 0xc0a   :  { %v2371_v20 = vpop.f32.mrf.mxu1 }
 0xc0b   :  { %v2091_v21 = vmul.f32 -1.442695, %v1203_v19 }
 0xc0d   :  { %2505 = vpow2.f32 %v2091_v21 }
 0xc0e   :  { %v1377_v41 = vpop.f32.mrf.mxu1 }
 0xc0f   :  { %v1378_v47 = vadd.f32 %v1377_v41, %v2660_v12 }
 0xc10   :  { %v2391_v42 = vpop.f32.mrf.mxu1 }
 0xc1a   :  { %v2506_v22 = vpop.eup %2505 }
 0xc1b   :  { %v1207_v23 = vadd.f32 1.0, %v2506_v22 }
 0xc1d   :  { %2507 = vrcp.f32 %v1207_v23 }
 0xc2a   :  { %v2508_v24 = vpop.eup %2507 }
 0xc2b   :  { %v1210_v25 = vmul.f32 2.0, %v2508_v24  ;;  %v1212_v29 = vmul.f32 %v2508_v24, %v974_v61 }
 0xc2d   :  { %v2092_v26 = vadd.f32 -1.0, %v1210_v25 }
 0xc2f   :  { %1214 = vrot.lane.b32.xlu1 %v2092_v26, %s2531_s3 }
 0xca1   :  { %v1215_v27 = vpop.permute.xlu1 %1214 }
 0xca2   :  { %v1217_v28 = vmul.f32 %v2508_v24, %v1215_v27 }
 0xca4   :  { %1219 = vrot.lane.b32.xlu0 %v1217_v28, %s2532_s1 }
 0xd16   :  { %v1220_v30 = vpop.permute.xlu0 %1219 }
 0xd17   :  { %v1222_v31 = vadd.f32 %v1220_v30, %v1212_v29  ;;  %v2109_v30 = vld [vmem:[%s3014_s0 + $0x38] sm:$0xff] }
 0xd19   :  { %2509 = vtanh.f32 %v1222_v31 }
 0xd26   :  { %v2510_v36 = vpop.eup %2509 }
 0xd27   :  { %1225 = vrot.lane.b32.xlu1 %v2510_v36, %s2531_s3 }
 0xd99   :  { %v1226_v38 = vpop.permute.xlu1 %1225 }
 0xd9a   :  { %v1228_v39 = vmul.f32 %v2508_v24, %v1226_v38 }
 0xd9c   :  { %1230 = vrot.lane.b32.xlu0 %v1228_v39, %s2532_s1 }
 0xe0e   :  { %v1231_v40 = vpop.permute.xlu0 %1230 }
 0xe0f   :  { %2381 = vmatmul.mubr.msk.f32.vlgmr.msra.gmra.mxu0 %vm34_vm0, %v1231_v40 }
 0xe10   :  { %2393 = vmatpush3.msra.mxu0 %v2589_v2  ;;  %2400 = vmatprep.mubr.msk.f32.mxu0 %vm2530_vm2, %v2529_v0 }
 0xe11   :  { %2394 = vmatprep.subr.mxu0 %v2529_v0 }
 0xe12   :  { %2395 = vmatpush3.msra.mxu0 %v2601_v4 }
 0xe13   :  { %2396 = vmatprep.subr.mxu0 %v2529_v0 }
 0xe14   :  { %2397 = vmatpush3.msra.mxu0 %v2621_v8 }
 0xe15   :  { %2398 = vmatprep.subr.mxu0 %v2529_v0 }
 0xe16   :  { %2399 = vmatpush3.msra.mxu0 %v2632_v9 }
 0xe17   :  { %2401 = vmatmul.mubr.msk.f32.vlgmr.msra.gmra.mxu0 %vm34_vm0, %v1231_v40  ;;  %2414 = vmatprep.subr.mxu0 %v2529_v0 }
 0xe18   :  { %2415 = vmatpush3.msra.mxu0 %v2583_v1  ;;  %2420 = vmatprep.mubr.msk.f32.mxu0 %vm2530_vm2, %v2529_v0 }
 0xe19   :  { %2416 = vmatprep.subr.mxu0 %v2529_v0 }
 0xe1a   :  { %2417 = vmatpush3.msra.mxu0 %v2594_v3 }
 0xe1b   :  { %2418 = vmatprep.subr.mxu0 %v2529_v0 }
 0xe1c   :  { %2419 = vmatpush3.msra.mxu0 %v2608_v5 }
 0xe1d   :  { %2434 = vmatprep.subr.mxu0 %v2529_v0  ;;  %2421 = vmatmul.mubr.msk.f32.vlgmr.msra.gmra.mxu0 %vm60_vm1, %v2102_v63 }
 0xe1e   :  { %2435 = vmatpush3.msra.mxu0 %v2672_v32  ;;  %2442 = vmatprep.mubr.msk.f32.mxu0 %vm2530_vm2, %v2529_v0 }
 0xe1f   :  { %2436 = vmatprep.subr.mxu0 %v2529_v0 }
 0xe20   :  { %2437 = vmatpush3.msra.mxu0 %v2677_v33 }
 0xe21   :  { %2438 = vmatprep.subr.mxu0 %v2529_v0 }
 0xe22   :  { %2439 = vmatpush3.msra.mxu0 %v2684_v34 }
 0xe23   :  { %2440 = vmatprep.subr.mxu0 %v2529_v0 }
 0xe24   :  { %2441 = vmatpush3.msra.mxu0 %v2691_v35 }
 0xe25   :  { %2454 = vmatprep.subr.mxu0 %v2529_v0 }
 0xecf   :  { %v1300_v44 = vpop.f32.mrf.mxu0 }
 0xed0   :  { %v1301_v45 = vadd.f32 %v2736_v43, %v1300_v44 }
 0xed1   :  { %v2382_v46 = vpop.f32.mrf.mxu0 }
 0xed2   :  { %2094 = vst.msk [vmem:[%s3019_s8 + $0x20] sm:$0xff] %vm60_vm1, %v1301_v45 }
 0xed7   :  { %v1447_v48 = vpop.f32.mrf.mxu0 }
 0xed8   :  { %v1451_v49 = vadd.f32 %v1447_v48, %v1378_v47 }
 0xed9   :  { %v2402_v50 = vpop.f32.mrf.mxu0 }
 0xeda   :  { %v2098_v51 = vmul.f32 -1.442695, %v1451_v49 }
 0xedc   :  { %2511 = vpow2.f32 %v2098_v51 }
 0xedd   :  { %v1625_v11 = vpop.f32.mrf.mxu0 }
 0xedf   :  { %v2422_v13 = vpop.f32.mrf.mxu0 }
 0xee9   :  { %v2512_v52 = vpop.eup %2511 }
 0xeea   :  { %v1455_v53 = vadd.f32 1.0, %v2512_v52 }
 0xeec   :  { %2513 = vrcp.f32 %v1455_v53 }
 0xef9   :  { %v2514_v54 = vpop.eup %2513 }
 0xefa   :  { %v1458_v55 = vmul.f32 2.0, %v2514_v54  ;;  %v1460_v59 = vmul.f32 %v2514_v54, %v1222_v31 }
 0xefc   :  { %v2099_v56 = vadd.f32 -1.0, %v1458_v55 }
 0xefe   :  { %1462 = vrot.lane.b32.xlu1 %v2099_v56, %s2531_s3 }
 0xf70   :  { %v1463_v57 = vpop.permute.xlu1 %1462 }
 0xf71   :  { %v1465_v58 = vmul.f32 %v2514_v54, %v1463_v57 }
 0xf73   :  { %1467 = vrot.lane.b32.xlu0 %v1465_v58, %s2532_s1 }
 0xfe5   :  { %v1468_v60 = vpop.permute.xlu0 %1467 }
 0xfe6   :  { %v1470_v61 = vadd.f32 %v1468_v60, %v1460_v59 }
 0xfe8   :  { %2515 = vtanh.f32 %v1470_v61 }
 0xff5   :  { %v2516_v62 = vpop.eup %2515 }
 0xff6   :  { %1473 = vrot.lane.b32.xlu1 %v2516_v62, %s2531_s3 }
0x1068   :  { %v1474_v6 = vpop.permute.xlu1 %1473 }
0x1069   :  { %v1476_v7 = vmul.f32 %v2514_v54, %v1474_v6 }
0x106b   :  { %1478 = vrot.lane.b32.xlu0 %v1476_v7, %s2532_s1 }
0x10dd   :  { %v1479_v10 = vpop.permute.xlu0 %1478 }
0x10de   :  { %2412 = vmatmul.mubr.msk.f32.vlgmr.msra.gmra.mxu1 %vm34_vm0, %v1479_v10 }
0x10df   :  { %2424 = vmatpush3.msra.mxu1 %v2589_v2  ;;  %2431 = vmatprep.mubr.msk.f32.mxu1 %vm2530_vm2, %v2529_v0 }
0x10e0   :  { %2425 = vmatprep.subr.mxu1 %v2529_v0 }
0x10e1   :  { %2426 = vmatpush3.msra.mxu1 %v2601_v4 }
0x10e2   :  { %2427 = vmatprep.subr.mxu1 %v2529_v0 }
0x10e3   :  { %2428 = vmatpush3.msra.mxu1 %v2621_v8 }
0x10e4   :  { %2429 = vmatprep.subr.mxu1 %v2529_v0 }
0x10e5   :  { %2430 = vmatpush3.msra.mxu1 %v2632_v9 }
0x10e6   :  { %2432 = vmatmul.mubr.msk.f32.vlgmr.msra.gmra.mxu1 %vm34_vm0, %v1479_v10  ;;  %2445 = vmatprep.subr.mxu1 %v2529_v0 }
0x10e7   :  { %2446 = vmatpush3.msra.mxu1 %v2583_v1  ;;  %2451 = vmatprep.mubr.msk.f32.mxu1 %vm2530_vm2, %v2529_v0  ;;  %v1626_v1 = vadd.f32 %v1625_v11, %v2660_v12 }
0x10e8   :  { %2447 = vmatprep.subr.mxu1 %v2529_v0 }
0x10e9   :  { %2448 = vmatpush3.msra.mxu1 %v2594_v3 }
0x10ea   :  { %2449 = vmatprep.subr.mxu1 %v2529_v0 }
0x10eb   :  { %2450 = vmatpush3.msra.mxu1 %v2608_v5 }
0x10ec   :  { %2465 = vmatprep.subr.mxu1 %v2529_v0  ;;  %2452 = vmatmul.mubr.msk.f32.vlgmr.msra.gmra.mxu1 %vm60_vm1, %v2109_v30 }
0x10ed   :  { %2466 = vmatpush3.msra.mxu1 %v2672_v32  ;;  %2473 = vmatprep.mubr.msk.f32.mxu1 %vm2530_vm2, %v2529_v0 }
0x10ee   :  { %2467 = vmatprep.subr.mxu1 %v2529_v0 }
0x10ef   :  { %2468 = vmatpush3.msra.mxu1 %v2677_v33 }
0x10f0   :  { %2469 = vmatprep.subr.mxu1 %v2529_v0 }
0x10f1   :  { %2470 = vmatpush3.msra.mxu1 %v2684_v34 }
0x10f2   :  { %2471 = vmatprep.subr.mxu1 %v2529_v0 }
0x10f3   :  { %2472 = vmatpush3.msra.mxu1 %v2691_v35 }
0x119e   :  { %v1548_v14 = vpop.f32.mrf.mxu1 }
0x119f   :  { %v1549_v15 = vadd.f32 %v2736_v43, %v1548_v14 }
0x11a0   :  { %v2413_v16 = vpop.f32.mrf.mxu1 }
0x11a1   :  { %2101 = vst.msk [vmem:[%s3019_s8 + $0x28] sm:$0xff] %vm60_vm1, %v1549_v15 }
0x11a6   :  { %v1695_v3 = vpop.f32.mrf.mxu1 }
0x11a7   :  { %v1699_v17 = vadd.f32 %v1695_v3, %v1626_v1 }
0x11a8   :  { %v2433_v18 = vpop.f32.mrf.mxu1 }
0x11a9   :  { %v2105_v19 = vmul.f32 -1.442695, %v1699_v17 }
0x11ab   :  { %2517 = vpow2.f32 %v2105_v19 }
0x11ac   :  { %v1873_v33 = vpop.f32.mrf.mxu1 }
0x11ae   :  { %v2453_v34 = vpop.f32.mrf.mxu1 }
0x11b8   :  { %v2518_v5 = vpop.eup %2517 }
0x11b9   :  { %v1703_v20 = vadd.f32 1.0, %v2518_v5 }
0x11bb   :  { %2519 = vrcp.f32 %v1703_v20 }
0x11c8   :  { %v2520_v21 = vpop.eup %2519 }
0x11c9   :  { %v1706_v22 = vmul.f32 2.0, %v2520_v21  ;;  %v1708_v26 = vmul.f32 %v2520_v21, %v1470_v61 }
0x11cb   :  { %v2106_v23 = vadd.f32 -1.0, %v1706_v22 }
0x11cd   :  { %1710 = vrot.lane.b32.xlu1 %v2106_v23, %s2531_s3 }
0x123f   :  { %v1711_v24 = vpop.permute.xlu1 %1710 }
0x1240   :  { %v1713_v25 = vmul.f32 %v2520_v21, %v1711_v24 }
0x1242   :  { %1715 = vrot.lane.b32.xlu0 %v1713_v25, %s2532_s1 }
0x12b4   :  { %v1716_v27 = vpop.permute.xlu0 %1715 }
0x12b5   :  { %v1718_v28 = vadd.f32 %v1716_v27, %v1708_v26 }
0x12b7   :  { %2521 = vtanh.f32 %v1718_v28 }
0x12c4   :  { %v2522_v29 = vpop.eup %2521 }
0x12c5   :  { %1721 = vrot.lane.b32.xlu1 %v2522_v29, %s2531_s3 }
0x1337   :  { %v1722_v31 = vpop.permute.xlu1 %1721 }
0x1338   :  { %v1724_v36 = vmul.f32 %v2520_v21, %v1722_v31 }
0x133a   :  { %1726 = vrot.lane.b32.xlu0 %v1724_v36, %s2532_s1 }
0x13ac   :  { %v1727_v32 = vpop.permute.xlu0 %1726 }
0x13ad   :  { %2443 = vmatmul.mubr.msk.f32.vlgmr.msra.gmra.mxu0 %vm34_vm0, %v1727_v32 }
0x13ae   :  { %2455 = vmatpush3.msra.mxu0 %v2589_v2  ;;  %2462 = vmatprep.mubr.msk.f32.mxu0 %vm2530_vm2, %v2529_v0 }
0x13af   :  { %2456 = vmatprep.subr.mxu0 %v2529_v0 }
0x13b0   :  { %2457 = vmatpush3.msra.mxu0 %v2601_v4  ;;  %v1874_v4 = vadd.f32 %v1873_v33, %v2660_v12 }
0x13b1   :  { %2458 = vmatprep.subr.mxu0 %v2529_v0 }
0x13b2   :  { %2459 = vmatpush3.msra.mxu0 %v2621_v8 }
0x13b3   :  { %2460 = vmatprep.subr.mxu0 %v2529_v0 }
0x13b4   :  { %2461 = vmatpush3.msra.mxu0 %v2632_v9 }
0x13b5   :  { %2463 = vmatmul.mubr.msk.f32.vlgmr.msra.gmra.mxu0 %vm34_vm0, %v1727_v32 }
0x146d   :  { %v1796_v2 = vpop.f32.mrf.mxu0 }
0x146e   :  { %v1797_v35 = vadd.f32 %v2736_v43, %v1796_v2 }
0x146f   :  { %v2444_v37 = vpop.f32.mrf.mxu0 }
0x1470   :  { %2108 = vst.msk [vmem:[%s3019_s8 + $0x30] sm:$0xff] %vm60_vm1, %v1797_v35 }
0x1475   :  { %v1943_v8 = vpop.f32.mrf.mxu0 }
0x1476   :  { %v1947_v38 = vadd.f32 %v1943_v8, %v1874_v4 }
0x1477   :  { %v2464_v0 = vpop.f32.mrf.mxu0 }
0x1478   :  { %v2112_v39 = vmul.f32 -1.442695, %v1947_v38 }
0x147a   :  { %2523 = vpow2.f32 %v2112_v39 }
0x1487   :  { %v2524_v9 = vpop.eup %2523 }
0x1488   :  { %v1951_v40 = vadd.f32 1.0, %v2524_v9 }
0x148a   :  { %2525 = vrcp.f32 %v1951_v40 }
0x1497   :  { %v2526_v41 = vpop.eup %2525 }
0x1498   :  { %v1954_v42 = vmul.f32 2.0, %v2526_v41  ;;  %v1956_v47 = vmul.f32 %v2526_v41, %v1718_v28 }
0x149a   :  { %v2113_v44 = vadd.f32 -1.0, %v1954_v42 }
0x149c   :  { %1958 = vrot.lane.b32.xlu1 %v2113_v44, %s2531_s3 }
0x150e   :  { %v1959_v45 = vpop.permute.xlu1 %1958 }
0x150f   :  { %v1961_v46 = vmul.f32 %v2526_v41, %v1959_v45 }
0x1511   :  { %1963 = vrot.lane.b32.xlu0 %v1961_v46, %s2532_s1 }
0x1583   :  { %v1964_v48 = vpop.permute.xlu0 %1963 }
0x1584   :  { %v1966_v12 = vadd.f32 %v1964_v48, %v1956_v47 }
0x1586   :  { %2527 = vtanh.f32 %v1966_v12 }
0x1593   :  { %v2528_v49 = vpop.eup %2527 }
0x1594   :  { %1969 = vrot.lane.b32.xlu1 %v2528_v49, %s2531_s3 }
0x1598   :  { %2053 = vrot.lane.b32.xlu1 %v1966_v12, %s2533_s6 }
0x1606   :  { %v1970_v50 = vpop.permute.xlu1 %1969 }
0x1607   :  { %v1972_v51 = vmul.f32 %v2526_v41, %v1970_v50 }
0x1609   :  { %1974 = vrot.lane.b32.xlu0 %v1972_v51, %s2532_s1 }
0x160a   :  { %v2054_v52 = vpop.permute.xlu1 %2053 }
0x160b   :  { %2056 = vst.msk [vmem:[#allocation3] sm:$0xff] %vm34_vm0, %v2054_v52 }
0x167b   :  { %v1975_v53 = vpop.permute.xlu0 %1974 }
0x167c   :  { %2051 = vst.msk [vmem:[#allocation2] sm:$0xff] %vm34_vm0, %v1975_v53  ;;  %2474 = vmatmul.mubr.msk.f32.vlgmr.msra.gmra.mxu1 %vm34_vm0, %v1975_v53 }
0x173c   :  { %v2044_v54 = vpop.f32.mrf.mxu1 }
0x173d   :  { %v2045_v55 = vadd.f32 %v2736_v43, %v2044_v54 }
0x173e   :  { %v2475_v56 = vpop.f32.mrf.mxu1 }
0x173f   :  { %2115 = vst.msk [vmem:[%s3019_s8 + $0x38] sm:$0xff] %vm60_vm1, %v2045_v55 }

</bundles_post_ra>
